<compile_context>
chip_gen: v7x
topology: tpu7x:2x2x1
jax: 0.10.0
libtpu: 0.0.40
codegen_flags: <defaults>
</compile_context>

<pallas_src>
import functools
import math

import numpy as np
import jax
import jax.numpy as jnp
from jax.experimental import pallas as pl
from jax.experimental.pallas import tpu as pltpu


# ---------------------------------------------------------------------------
# Pallas kernel: full ResBlock for one batch element, layout (C, H*W).
# ---------------------------------------------------------------------------
def _lane_shift(a, off):
    """out[:, p] = a[:, (p + off) % N] — circular shift along the lane axis."""
    n = a.shape[-1]
    s = off % n
    if s == 0:
        return a
    return jnp.concatenate([a[:, s:], a[:, :s]], axis=1)


def _resblock_kernel(x_ref, wb_ref, ws_ref, bb_ref, bs_ref, m_ref, o_ref, *, W):
    # x_ref : (1, C, HW)   f32   one NCHW image, spatial flattened into lanes
    # wb_ref: (3, C, 9*C)  bf16  conv1/conv3/conv5 weights, im2col (Cout, 9*Cin)
    # ws_ref: (2, Cs, 9*Cs)bf16  conv2/conv4 weights (true side-channel convs)
    # bb_ref: (C, 6)       f32   columns = [b1, b3, b5, a1, a3, a_out]
    # bs_ref: (Cs, 4)      f32   columns = [b2, b4, a2, a4]
    # m_ref : (9, HW)      bf16  0/1 border-validity mask per 3x3 tap
    _, C, HW = x_ref.shape
    Cs = ws_ref.shape[1]
    Cres = C - Cs

    # Hoist the tiny mask rows once (reused by every conv pass).
    mask_rows = [m_ref[t:t + 1, :] for t in range(9)]          # each (1, HW)

    def conv3x3(feat, wmat, b):
        # feat: (Cin, HW) f32 -> one K-packed im2col matmul on the MXU.
        f16 = feat.astype(jnp.bfloat16)                        # cast once per conv
        cols = []
        for t in range(9):
            dy, dx = divmod(t, 3)
            off = (dy - 1) * W + (dx - 1)                      # flat spatial shift
            if off == 0:                                       # center tap
                cols.append(f16)
            else:
                col = _lane_shift(f16, off)
                cols.append(col * mask_rows[t])                # zero wrapped border
        slab = jnp.concatenate(cols, axis=0)                   # (9*Cin, HW) bf16
        return jnp.dot(wmat, slab, preferred_element_type=jnp.float32) + b

    def prelu(v, a):
        return jnp.where(v >= 0.0, v, v * a)

    x = x_ref[0]                                                        # (C, HW) f32

    # conv1 + PReLU
    out = prelu(conv3x3(x, wb_ref[0], bb_ref[:, 0:1]), bb_ref[:, 3:4])
    # conv2 on side channels + PReLU, then torch.cat([res, side]) (sublane concat)
    side = prelu(conv3x3(out[Cres:, :], ws_ref[0], bs_ref[:, 0:1]), bs_ref[:, 2:3])
    out = jnp.concatenate([out[:Cres, :], side], axis=0)
    # conv3 + PReLU (original unsplit weights)
    out = prelu(conv3x3(out, wb_ref[1], bb_ref[:, 1:2]), bb_ref[:, 4:5])
    # conv4 on side channels + PReLU, then torch.cat([res, side])
    side = prelu(conv3x3(out[Cres:, :], ws_ref[1], bs_ref[:, 1:2]), bs_ref[:, 3:4])
    out = jnp.concatenate([out[:Cres, :], side], axis=0)
    # conv5 (no PReLU), residual, final PReLU
    out = conv3x3(out, wb_ref[2], bb_ref[:, 2:3])
    y = prelu(x + out, bb_ref[:, 5:6])
    o_ref[0] = y.astype(o_ref.dtype)


def resblock_pallas(x_flat, w_big, w_side, bs_big, bs_side, masks, W):
    B, C, HW = x_flat.shape
    kernel = functools.partial(_resblock_kernel, W=W)
    return pl.pallas_call(
        kernel,
        out_shape=jax.ShapeDtypeStruct((B, C, HW), x_flat.dtype),
        grid_spec=pltpu.PrefetchScalarGridSpec(
            num_scalar_prefetch=0,
            grid=(B,),
            in_specs=[
                pl.BlockSpec((1, C, HW), lambda b: (b, 0, 0)),
                pl.BlockSpec(w_big.shape, lambda b: (0, 0, 0)),   # constants: same
                pl.BlockSpec(w_side.shape, lambda b: (0, 0, 0)),  # block every step
                pl.BlockSpec(bs_big.shape, lambda b: (0, 0)),     # -> no re-DMA
                pl.BlockSpec(bs_side.shape, lambda b: (0, 0)),
                pl.BlockSpec(masks.shape, lambda b: (0, 0)),
            ],
            out_specs=pl.BlockSpec((1, C, HW), lambda b: (b, 0, 0)),
        ),
        compiler_params=pltpu.CompilerParams(dimension_semantics=("parallel",)),
    )(x_flat, w_big, w_side, bs_big, bs_side, masks)


@jax.jit
def resblock_forward(x_nchw, w_big, w_side, bs_big, bs_side):
    B, C, H, W = x_nchw.shape
    masks = jnp.asarray(_make_tap_masks(H, W), jnp.bfloat16)     # host constant
    y = resblock_pallas(x_nchw.reshape(B, C, H * W),
                        w_big, w_side, bs_big, bs_side, masks, W)
    return y.reshape(B, C, H, W)


# ---------------------------------------------------------------------------
# One-time constant preprocessing (hoisted out of the kernel).
# ---------------------------------------------------------------------------
def _make_tap_masks(H, W):
    """(9, H*W) 0/1 validity masks for 'same' padding of each 3x3 tap."""
    yy, xx = np.meshgrid(np.arange(H), np.arange(W), indexing="ij")
    yy, xx = yy.reshape(-1), xx.reshape(-1)
    m = np.zeros((9, H * W), np.float32)
    for t in range(9):
        dy, dx = divmod(t, 3)
        ok = ((yy + dy - 1 >= 0) & (yy + dy - 1 < H) &
              (xx + dx - 1 >= 0) & (xx + dx - 1 < W))
        m[t] = ok.astype(np.float32)
    return m


def pack_resblock_params(p, in_channels, side_channels):
    def im2col_w(w):   # torch OIHW (Cout, Cin, 3, 3) -> (Cout, 9*Cin), col = tap*Cin+ci
        cout, cin = w.shape[0], w.shape[1]
        return jnp.transpose(w, (0, 2, 3, 1)).reshape(cout, 9 * cin)

    w_big = jnp.stack([im2col_w(p["w1"]), im2col_w(p["w3"]),
                       im2col_w(p["w5"])]).astype(jnp.bfloat16)           # (3, C, 9C)
    w_side = jnp.stack([im2col_w(p["w2"]),
                        im2col_w(p["w4"])]).astype(jnp.bfloat16)          # (2, Cs, 9Cs)
    bs_big = jnp.stack([p["b1"], p["b3"], p["b5"],
                        p["a1"], p["a3"], p["a_out"]], axis=1).astype(jnp.float32)
    bs_side = jnp.stack([p["b2"], p["b4"],
                         p["a2"], p["a4"]], axis=1).astype(jnp.float32)
    return w_big, w_side, bs_big, bs_side


def init_resblock_params(key, in_channels, side_channels):
    def conv_init(k, cout, cin):
        kw, kb = jax.random.split(k)
        bound = 1.0 / math.sqrt(cin * 9)
        w = jax.random.uniform(kw, (cout, cin, 3, 3), jnp.float32, -bound, bound)
        b = jax.random.uniform(kb, (cout,), jnp.float32, -bound, bound)
        return w, b

    ks = jax.random.split(key, 10)
    w1, b1 = conv_init(ks[0], in_channels, in_channels)
    w2, b2 = conv_init(ks[1], side_channels, side_channels)
    w3, b3 = conv_init(ks[2], in_channels, in_channels)
    w4, b4 = conv_init(ks[3], side_channels, side_channels)
    w5, b5 = conv_init(ks[4], in_channels, in_channels)
    a1 = jax.random.uniform(ks[5], (in_channels,), jnp.float32, 0.1, 0.4)
    a2 = jax.random.uniform(ks[6], (side_channels,), jnp.float32, 0.1, 0.4)
    a3 = jax.random.uniform(ks[7], (in_channels,), jnp.float32, 0.1, 0.4)
    a4 = jax.random.uniform(ks[8], (side_channels,), jnp.float32, 0.1, 0.4)
    a5 = jax.random.uniform(ks[9], (in_channels,), jnp.float32, 0.1, 0.4)
    return dict(w1=w1, b1=b1, a1=a1, w2=w2, b2=b2, a2=a2, w3=w3, b3=b3, a3=a3,
                w4=w4, b4=b4, a4=a4, w5=w5, b5=b5, a_out=a5)


# ---------------------------------------------------------------------------
# Pure-JAX reference (mirrors the PyTorch ResBlock.forward).
# ---------------------------------------------------------------------------
def _conv_ref(x, w, b):
    y = jax.lax.conv_general_dilated(
        x, jnp.transpose(w, (2, 3, 1, 0)), (1, 1), "SAME",
        dimension_numbers=("NHWC", "HWIO", "NHWC"),
        precision=jax.lax.Precision.HIGHEST)
    return y + b[None, None, None, :]


def _prelu_ref(v, a):
    return jnp.where(v >= 0.0, v, v * a[None, None, None, :])


def resblock_reference(x_nchw, p, side_channels):
    x = jnp.transpose(x_nchw, (0, 2, 3, 1))
    cs = side_channels
    out = _prelu_ref(_conv_ref(x, p["w1"], p["b1"]), p["a1"])
    res, side = out[..., :-cs], out[..., -cs:]
    side = _prelu_ref(_conv_ref(side, p["w2"], p["b2"]), p["a2"])
    out = _prelu_ref(_conv_ref(jnp.concatenate([res, side], -1), p["w3"], p["b3"]), p["a3"])
    res, side = out[..., :-cs], out[..., -cs:]
    side = _prelu_ref(_conv_ref(side, p["w4"], p["b4"]), p["a4"])
    out = _conv_ref(jnp.concatenate([res, side], -1), p["w5"], p["b5"])
    out = _prelu_ref(x + out, p["a_out"])
    return jnp.transpose(out, (0, 3, 1, 2))


if __name__ == "__main__":
    key = jax.random.PRNGKey(0)
    k_x, k_p = jax.random.split(key)

    B, C, CS, H, W = 2, 32, 8, 16, 16
    x = jax.random.normal(k_x, (B, C, H, W), jnp.float32)
    params = init_resblock_params(k_p, C, CS)
    packed = pack_resblock_params(params, C, CS)      # constants, packed once

    y = resblock_forward(x, *packed)
    y = jax.block_until_ready(y)
    assert y.shape == (B, C, H, W), y.shape
    assert y.dtype == jnp.float32

    ref = resblock_reference(x, params, CS)
    err = float(jnp.max(jnp.abs(y - ref)))
    assert err < 1e-1, f"max abs error vs reference: {err}"
    print("KERNEL_OK")
</pallas_src>

<mosaic_0001>
module attributes {stable_mosaic.version = 11 : i64} {
  func.func @_resblock_kernel(%arg0: i32, %arg1: memref<1x32x256xf32, #tpu.memory_space<vmem>>, %arg2: memref<3x32x288xbf16, #tpu.memory_space<vmem>>, %arg3: memref<2x8x72xbf16, #tpu.memory_space<vmem>>, %arg4: memref<32x6xf32, #tpu.memory_space<vmem>>, %arg5: memref<8x4xf32, #tpu.memory_space<vmem>>, %arg6: memref<9x256xbf16, #tpu.memory_space<vmem>>, %arg7: memref<1x32x256xf32, #tpu.memory_space<vmem>>) attributes {dimension_semantics = [#tpu.dimension_semantics<parallel>], iteration_bounds = array<i64: 2>, scalar_prefetch = 0 : i64, scratch_operands = 0 : i64, tpu.core_type = #tpu.core_type<tc>, window_params = [{transform_indices = @transform_0, window_bounds = array<i64: 1, 32, 256>}, {pipeline_mode = #tpu.pipeline_mode<synchronous>, transform_indices = @transform_1, window_bounds = array<i64: 3, 32, 288>}, {pipeline_mode = #tpu.pipeline_mode<synchronous>, transform_indices = @transform_2, window_bounds = array<i64: 2, 8, 72>}, {pipeline_mode = #tpu.pipeline_mode<synchronous>, transform_indices = @transform_3, window_bounds = array<i64: 32, 6>}, {pipeline_mode = #tpu.pipeline_mode<synchronous>, transform_indices = @transform_4, window_bounds = array<i64: 8, 4>}, {pipeline_mode = #tpu.pipeline_mode<synchronous>, transform_indices = @transform_5, window_bounds = array<i64: 9, 256>}, {transform_indices = @transform_6, window_bounds = array<i64: 1, 32, 256>}]} {
    %c0 = arith.constant 0 : index
    %c0_0 = arith.constant 0 : index
    %0 = vector.load %arg6[%c0, %c0_0] : memref<9x256xbf16, #tpu.memory_space<vmem>>, vector<1x256xbf16>
    %c1 = arith.constant 1 : index
    %c0_1 = arith.constant 0 : index
    %1 = vector.load %arg6[%c1, %c0_1] : memref<9x256xbf16, #tpu.memory_space<vmem>>, vector<1x256xbf16>
    %c2 = arith.constant 2 : index
    %c0_2 = arith.constant 0 : index
    %2 = vector.load %arg6[%c2, %c0_2] : memref<9x256xbf16, #tpu.memory_space<vmem>>, vector<1x256xbf16>
    %c3 = arith.constant 3 : index
    %c0_3 = arith.constant 0 : index
    %3 = vector.load %arg6[%c3, %c0_3] : memref<9x256xbf16, #tpu.memory_space<vmem>>, vector<1x256xbf16>
    %c5 = arith.constant 5 : index
    %c0_4 = arith.constant 0 : index
    %4 = vector.load %arg6[%c5, %c0_4] : memref<9x256xbf16, #tpu.memory_space<vmem>>, vector<1x256xbf16>
    %c6 = arith.constant 6 : index
    %c0_5 = arith.constant 0 : index
    %5 = vector.load %arg6[%c6, %c0_5] : memref<9x256xbf16, #tpu.memory_space<vmem>>, vector<1x256xbf16>
    %c7 = arith.constant 7 : index
    %c0_6 = arith.constant 0 : index
    %6 = vector.load %arg6[%c7, %c0_6] : memref<9x256xbf16, #tpu.memory_space<vmem>>, vector<1x256xbf16>
    %c8 = arith.constant 8 : index
    %c0_7 = arith.constant 0 : index
    %7 = vector.load %arg6[%c8, %c0_7] : memref<9x256xbf16, #tpu.memory_space<vmem>>, vector<1x256xbf16>
    %c0_8 = arith.constant 0 : index
    %c0_9 = arith.constant 0 : index
    %c0_10 = arith.constant 0 : index
    %8 = vector.load %arg1[%c0_8, %c0_9, %c0_10] : memref<1x32x256xf32, #tpu.memory_space<vmem>>, vector<1x32x256xf32>
    %9 = vector.shape_cast %8 : vector<1x32x256xf32> to vector<32x256xf32>
    %c0_11 = arith.constant 0 : index
    %c0_12 = arith.constant 0 : index
    %c0_13 = arith.constant 0 : index
    %10 = vector.load %arg2[%c0_11, %c0_12, %c0_13] : memref<3x32x288xbf16, #tpu.memory_space<vmem>>, vector<1x32x288xbf16>
    %11 = vector.shape_cast %10 : vector<1x32x288xbf16> to vector<32x288xbf16>
    %c0_14 = arith.constant 0 : index
    %c0_15 = arith.constant 0 : index
    %12 = vector.load %arg4[%c0_14, %c0_15] : memref<32x6xf32, #tpu.memory_space<vmem>>, vector<32x1xf32>
    %13 = arith.truncf %9 : vector<32x256xf32> to vector<32x256xbf16>
    %14 = vector.extract_strided_slice %13 {offsets = [0, 239], sizes = [32, 17], strides = [1, 1]} : vector<32x256xbf16> to vector<32x17xbf16>
    %15 = vector.extract_strided_slice %13 {offsets = [0, 0], sizes = [32, 239], strides = [1, 1]} : vector<32x256xbf16> to vector<32x239xbf16>
    %16 = tpu.concatenate %14, %15 in 1 : vector<32x17xbf16>, vector<32x239xbf16> -> vector<32x256xbf16>
    %17 = vector.broadcast %0 : vector<1x256xbf16> to vector<32x256xbf16>
    %18 = arith.mulf %16, %17 : vector<32x256xbf16>
    %19 = vector.extract_strided_slice %13 {offsets = [0, 240], sizes = [32, 16], strides = [1, 1]} : vector<32x256xbf16> to vector<32x16xbf16>
    %20 = vector.extract_strided_slice %13 {offsets = [0, 0], sizes = [32, 240], strides = [1, 1]} : vector<32x256xbf16> to vector<32x240xbf16>
    %21 = tpu.concatenate %19, %20 in 1 : vector<32x16xbf16>, vector<32x240xbf16> -> vector<32x256xbf16>
    %22 = vector.broadcast %1 : vector<1x256xbf16> to vector<32x256xbf16>
    %23 = arith.mulf %21, %22 : vector<32x256xbf16>
    %24 = vector.extract_strided_slice %13 {offsets = [0, 241], sizes = [32, 15], strides = [1, 1]} : vector<32x256xbf16> to vector<32x15xbf16>
    %25 = vector.extract_strided_slice %13 {offsets = [0, 0], sizes = [32, 241], strides = [1, 1]} : vector<32x256xbf16> to vector<32x241xbf16>
    %26 = tpu.concatenate %24, %25 in 1 : vector<32x15xbf16>, vector<32x241xbf16> -> vector<32x256xbf16>
    %27 = vector.broadcast %2 : vector<1x256xbf16> to vector<32x256xbf16>
    %28 = arith.mulf %26, %27 : vector<32x256xbf16>
    %29 = vector.extract_strided_slice %13 {offsets = [0, 255], sizes = [32, 1], strides = [1, 1]} : vector<32x256xbf16> to vector<32x1xbf16>
    %30 = vector.extract_strided_slice %13 {offsets = [0, 0], sizes = [32, 255], strides = [1, 1]} : vector<32x256xbf16> to vector<32x255xbf16>
    %31 = tpu.concatenate %29, %30 in 1 : vector<32x1xbf16>, vector<32x255xbf16> -> vector<32x256xbf16>
    %32 = vector.broadcast %3 : vector<1x256xbf16> to vector<32x256xbf16>
    %33 = arith.mulf %31, %32 : vector<32x256xbf16>
    %34 = vector.extract_strided_slice %13 {offsets = [0, 1], sizes = [32, 255], strides = [1, 1]} : vector<32x256xbf16> to vector<32x255xbf16>
    %35 = vector.extract_strided_slice %13 {offsets = [0, 0], sizes = [32, 1], strides = [1, 1]} : vector<32x256xbf16> to vector<32x1xbf16>
    %36 = tpu.concatenate %34, %35 in 1 : vector<32x255xbf16>, vector<32x1xbf16> -> vector<32x256xbf16>
    %37 = vector.broadcast %4 : vector<1x256xbf16> to vector<32x256xbf16>
    %38 = arith.mulf %36, %37 : vector<32x256xbf16>
    %39 = vector.extract_strided_slice %13 {offsets = [0, 15], sizes = [32, 241], strides = [1, 1]} : vector<32x256xbf16> to vector<32x241xbf16>
    %40 = vector.extract_strided_slice %13 {offsets = [0, 0], sizes = [32, 15], strides = [1, 1]} : vector<32x256xbf16> to vector<32x15xbf16>
    %41 = tpu.concatenate %39, %40 in 1 : vector<32x241xbf16>, vector<32x15xbf16> -> vector<32x256xbf16>
    %42 = vector.broadcast %5 : vector<1x256xbf16> to vector<32x256xbf16>
    %43 = arith.mulf %41, %42 : vector<32x256xbf16>
    %44 = vector.extract_strided_slice %13 {offsets = [0, 16], sizes = [32, 240], strides = [1, 1]} : vector<32x256xbf16> to vector<32x240xbf16>
    %45 = vector.extract_strided_slice %13 {offsets = [0, 0], sizes = [32, 16], strides = [1, 1]} : vector<32x256xbf16> to vector<32x16xbf16>
    %46 = tpu.concatenate %44, %45 in 1 : vector<32x240xbf16>, vector<32x16xbf16> -> vector<32x256xbf16>
    %47 = vector.broadcast %6 : vector<1x256xbf16> to vector<32x256xbf16>
    %48 = arith.mulf %46, %47 : vector<32x256xbf16>
    %49 = vector.extract_strided_slice %13 {offsets = [0, 17], sizes = [32, 239], strides = [1, 1]} : vector<32x256xbf16> to vector<32x239xbf16>
    %50 = vector.extract_strided_slice %13 {offsets = [0, 0], sizes = [32, 17], strides = [1, 1]} : vector<32x256xbf16> to vector<32x17xbf16>
    %51 = tpu.concatenate %49, %50 in 1 : vector<32x239xbf16>, vector<32x17xbf16> -> vector<32x256xbf16>
    %52 = vector.broadcast %7 : vector<1x256xbf16> to vector<32x256xbf16>
    %53 = arith.mulf %51, %52 : vector<32x256xbf16>
    %54 = tpu.concatenate %18, %23, %28, %33, %13, %38, %43, %48, %53 in 0 : vector<32x256xbf16>, vector<32x256xbf16>, vector<32x256xbf16>, vector<32x256xbf16>, vector<32x256xbf16>, vector<32x256xbf16>, vector<32x256xbf16>, vector<32x256xbf16>, vector<32x256xbf16> -> vector<288x256xbf16>
    %cst = arith.constant dense<0.000000e+00> : vector<32x256xf32>
    %55 = tpu.matmul %11, %54, %cst {dimension_numbers = #tpu.dot_dimension_numbers<[1], [0], [0], [1], [0, 0, 1, 1], [], []>} : vector<32x288xbf16>, vector<288x256xbf16>, vector<32x256xf32> -> vector<32x256xf32>
    %56 = vector.broadcast %12 : vector<32x1xf32> to vector<32x256xf32>
    %57 = arith.addf %55, %56 : vector<32x256xf32>
    %c0_16 = arith.constant 0 : index
    %c3_17 = arith.constant 3 : index
    %58 = vector.load %arg4[%c0_16, %c3_17] : memref<32x6xf32, #tpu.memory_space<vmem>>, vector<32x1xf32>
    %cst_18 = arith.constant 0.000000e+00 : f32
    %59 = vector.broadcast %cst_18 : f32 to vector<32x256xf32>
    %60 = arith.cmpf oge, %57, %59 : vector<32x256xf32>
    %61 = vector.broadcast %58 : vector<32x1xf32> to vector<32x256xf32>
    %62 = arith.mulf %57, %61 : vector<32x256xf32>
    %63 = arith.select %60, %57, %62 : vector<32x256xi1>, vector<32x256xf32>
    %64 = vector.extract_strided_slice %63 {offsets = [24, 0], sizes = [8, 256], strides = [1, 1]} : vector<32x256xf32> to vector<8x256xf32>
    %c0_19 = arith.constant 0 : index
    %c0_20 = arith.constant 0 : index
    %c0_21 = arith.constant 0 : index
    %65 = vector.load %arg3[%c0_19, %c0_20, %c0_21] : memref<2x8x72xbf16, #tpu.memory_space<vmem>>, vector<1x8x72xbf16>
    %66 = vector.shape_cast %65 : vector<1x8x72xbf16> to vector<8x72xbf16>
    %c0_22 = arith.constant 0 : index
    %c0_23 = arith.constant 0 : index
    %67 = vector.load %arg5[%c0_22, %c0_23] : memref<8x4xf32, #tpu.memory_space<vmem>>, vector<8x1xf32>
    %68 = arith.truncf %64 : vector<8x256xf32> to vector<8x256xbf16>
    %69 = vector.extract_strided_slice %68 {offsets = [0, 239], sizes = [8, 17], strides = [1, 1]} : vector<8x256xbf16> to vector<8x17xbf16>
    %70 = vector.extract_strided_slice %68 {offsets = [0, 0], sizes = [8, 239], strides = [1, 1]} : vector<8x256xbf16> to vector<8x239xbf16>
    %71 = tpu.concatenate %69, %70 in 1 : vector<8x17xbf16>, vector<8x239xbf16> -> vector<8x256xbf16>
    %72 = vector.broadcast %0 : vector<1x256xbf16> to vector<8x256xbf16>
    %73 = arith.mulf %71, %72 : vector<8x256xbf16>
    %74 = vector.extract_strided_slice %68 {offsets = [0, 240], sizes = [8, 16], strides = [1, 1]} : vector<8x256xbf16> to vector<8x16xbf16>
    %75 = vector.extract_strided_slice %68 {offsets = [0, 0], sizes = [8, 240], strides = [1, 1]} : vector<8x256xbf16> to vector<8x240xbf16>
    %76 = tpu.concatenate %74, %75 in 1 : vector<8x16xbf16>, vector<8x240xbf16> -> vector<8x256xbf16>
    %77 = vector.broadcast %1 : vector<1x256xbf16> to vector<8x256xbf16>
    %78 = arith.mulf %76, %77 : vector<8x256xbf16>
    %79 = vector.extract_strided_slice %68 {offsets = [0, 241], sizes = [8, 15], strides = [1, 1]} : vector<8x256xbf16> to vector<8x15xbf16>
    %80 = vector.extract_strided_slice %68 {offsets = [0, 0], sizes = [8, 241], strides = [1, 1]} : vector<8x256xbf16> to vector<8x241xbf16>
    %81 = tpu.concatenate %79, %80 in 1 : vector<8x15xbf16>, vector<8x241xbf16> -> vector<8x256xbf16>
    %82 = vector.broadcast %2 : vector<1x256xbf16> to vector<8x256xbf16>
    %83 = arith.mulf %81, %82 : vector<8x256xbf16>
    %84 = vector.extract_strided_slice %68 {offsets = [0, 255], sizes = [8, 1], strides = [1, 1]} : vector<8x256xbf16> to vector<8x1xbf16>
    %85 = vector.extract_strided_slice %68 {offsets = [0, 0], sizes = [8, 255], strides = [1, 1]} : vector<8x256xbf16> to vector<8x255xbf16>
    %86 = tpu.concatenate %84, %85 in 1 : vector<8x1xbf16>, vector<8x255xbf16> -> vector<8x256xbf16>
    %87 = vector.broadcast %3 : vector<1x256xbf16> to vector<8x256xbf16>
    %88 = arith.mulf %86, %87 : vector<8x256xbf16>
    %89 = vector.extract_strided_slice %68 {offsets = [0, 1], sizes = [8, 255], strides = [1, 1]} : vector<8x256xbf16> to vector<8x255xbf16>
    %90 = vector.extract_strided_slice %68 {offsets = [0, 0], sizes = [8, 1], strides = [1, 1]} : vector<8x256xbf16> to vector<8x1xbf16>
    %91 = tpu.concatenate %89, %90 in 1 : vector<8x255xbf16>, vector<8x1xbf16> -> vector<8x256xbf16>
    %92 = vector.broadcast %4 : vector<1x256xbf16> to vector<8x256xbf16>
    %93 = arith.mulf %91, %92 : vector<8x256xbf16>
    %94 = vector.extract_strided_slice %68 {offsets = [0, 15], sizes = [8, 241], strides = [1, 1]} : vector<8x256xbf16> to vector<8x241xbf16>
    %95 = vector.extract_strided_slice %68 {offsets = [0, 0], sizes = [8, 15], strides = [1, 1]} : vector<8x256xbf16> to vector<8x15xbf16>
    %96 = tpu.concatenate %94, %95 in 1 : vector<8x241xbf16>, vector<8x15xbf16> -> vector<8x256xbf16>
    %97 = vector.broadcast %5 : vector<1x256xbf16> to vector<8x256xbf16>
    %98 = arith.mulf %96, %97 : vector<8x256xbf16>
    %99 = vector.extract_strided_slice %68 {offsets = [0, 16], sizes = [8, 240], strides = [1, 1]} : vector<8x256xbf16> to vector<8x240xbf16>
    %100 = vector.extract_strided_slice %68 {offsets = [0, 0], sizes = [8, 16], strides = [1, 1]} : vector<8x256xbf16> to vector<8x16xbf16>
    %101 = tpu.concatenate %99, %100 in 1 : vector<8x240xbf16>, vector<8x16xbf16> -> vector<8x256xbf16>
    %102 = vector.broadcast %6 : vector<1x256xbf16> to vector<8x256xbf16>
    %103 = arith.mulf %101, %102 : vector<8x256xbf16>
    %104 = vector.extract_strided_slice %68 {offsets = [0, 17], sizes = [8, 239], strides = [1, 1]} : vector<8x256xbf16> to vector<8x239xbf16>
    %105 = vector.extract_strided_slice %68 {offsets = [0, 0], sizes = [8, 17], strides = [1, 1]} : vector<8x256xbf16> to vector<8x17xbf16>
    %106 = tpu.concatenate %104, %105 in 1 : vector<8x239xbf16>, vector<8x17xbf16> -> vector<8x256xbf16>
    %107 = vector.broadcast %7 : vector<1x256xbf16> to vector<8x256xbf16>
    %108 = arith.mulf %106, %107 : vector<8x256xbf16>
    %109 = tpu.concatenate %73, %78, %83, %88, %68, %93, %98, %103, %108 in 0 : vector<8x256xbf16>, vector<8x256xbf16>, vector<8x256xbf16>, vector<8x256xbf16>, vector<8x256xbf16>, vector<8x256xbf16>, vector<8x256xbf16>, vector<8x256xbf16>, vector<8x256xbf16> -> vector<72x256xbf16>
    %cst_24 = arith.constant dense<0.000000e+00> : vector<8x256xf32>
    %110 = tpu.matmul %66, %109, %cst_24 {dimension_numbers = #tpu.dot_dimension_numbers<[1], [0], [0], [1], [0, 0, 1, 1], [], []>} : vector<8x72xbf16>, vector<72x256xbf16>, vector<8x256xf32> -> vector<8x256xf32>
    %111 = vector.broadcast %67 : vector<8x1xf32> to vector<8x256xf32>
    %112 = arith.addf %110, %111 : vector<8x256xf32>
    %c0_25 = arith.constant 0 : index
    %c2_26 = arith.constant 2 : index
    %113 = vector.load %arg5[%c0_25, %c2_26] : memref<8x4xf32, #tpu.memory_space<vmem>>, vector<8x1xf32>
    %cst_27 = arith.constant 0.000000e+00 : f32
    %114 = vector.broadcast %cst_27 : f32 to vector<8x256xf32>
    %115 = arith.cmpf oge, %112, %114 : vector<8x256xf32>
    %116 = vector.broadcast %113 : vector<8x1xf32> to vector<8x256xf32>
    %117 = arith.mulf %112, %116 : vector<8x256xf32>
    %118 = arith.select %115, %112, %117 : vector<8x256xi1>, vector<8x256xf32>
    %119 = vector.extract_strided_slice %63 {offsets = [0, 0], sizes = [24, 256], strides = [1, 1]} : vector<32x256xf32> to vector<24x256xf32>
    %120 = tpu.concatenate %119, %118 in 0 : vector<24x256xf32>, vector<8x256xf32> -> vector<32x256xf32>
    %c1_28 = arith.constant 1 : index
    %c0_29 = arith.constant 0 : index
    %c0_30 = arith.constant 0 : index
    %121 = vector.load %arg2[%c1_28, %c0_29, %c0_30] : memref<3x32x288xbf16, #tpu.memory_space<vmem>>, vector<1x32x288xbf16>
    %122 = vector.shape_cast %121 : vector<1x32x288xbf16> to vector<32x288xbf16>
    %c0_31 = arith.constant 0 : index
    %c1_32 = arith.constant 1 : index
    %123 = vector.load %arg4[%c0_31, %c1_32] : memref<32x6xf32, #tpu.memory_space<vmem>>, vector<32x1xf32>
    %124 = arith.truncf %120 : vector<32x256xf32> to vector<32x256xbf16>
    %125 = vector.extract_strided_slice %124 {offsets = [0, 239], sizes = [32, 17], strides = [1, 1]} : vector<32x256xbf16> to vector<32x17xbf16>
    %126 = vector.extract_strided_slice %124 {offsets = [0, 0], sizes = [32, 239], strides = [1, 1]} : vector<32x256xbf16> to vector<32x239xbf16>
    %127 = tpu.concatenate %125, %126 in 1 : vector<32x17xbf16>, vector<32x239xbf16> -> vector<32x256xbf16>
    %128 = vector.broadcast %0 : vector<1x256xbf16> to vector<32x256xbf16>
    %129 = arith.mulf %127, %128 : vector<32x256xbf16>
    %130 = vector.extract_strided_slice %124 {offsets = [0, 240], sizes = [32, 16], strides = [1, 1]} : vector<32x256xbf16> to vector<32x16xbf16>
    %131 = vector.extract_strided_slice %124 {offsets = [0, 0], sizes = [32, 240], strides = [1, 1]} : vector<32x256xbf16> to vector<32x240xbf16>
    %132 = tpu.concatenate %130, %131 in 1 : vector<32x16xbf16>, vector<32x240xbf16> -> vector<32x256xbf16>
    %133 = vector.broadcast %1 : vector<1x256xbf16> to vector<32x256xbf16>
    %134 = arith.mulf %132, %133 : vector<32x256xbf16>
    %135 = vector.extract_strided_slice %124 {offsets = [0, 241], sizes = [32, 15], strides = [1, 1]} : vector<32x256xbf16> to vector<32x15xbf16>
    %136 = vector.extract_strided_slice %124 {offsets = [0, 0], sizes = [32, 241], strides = [1, 1]} : vector<32x256xbf16> to vector<32x241xbf16>
    %137 = tpu.concatenate %135, %136 in 1 : vector<32x15xbf16>, vector<32x241xbf16> -> vector<32x256xbf16>
    %138 = vector.broadcast %2 : vector<1x256xbf16> to vector<32x256xbf16>
    %139 = arith.mulf %137, %138 : vector<32x256xbf16>
    %140 = vector.extract_strided_slice %124 {offsets = [0, 255], sizes = [32, 1], strides = [1, 1]} : vector<32x256xbf16> to vector<32x1xbf16>
    %141 = vector.extract_strided_slice %124 {offsets = [0, 0], sizes = [32, 255], strides = [1, 1]} : vector<32x256xbf16> to vector<32x255xbf16>
    %142 = tpu.concatenate %140, %141 in 1 : vector<32x1xbf16>, vector<32x255xbf16> -> vector<32x256xbf16>
    %143 = vector.broadcast %3 : vector<1x256xbf16> to vector<32x256xbf16>
    %144 = arith.mulf %142, %143 : vector<32x256xbf16>
    %145 = vector.extract_strided_slice %124 {offsets = [0, 1], sizes = [32, 255], strides = [1, 1]} : vector<32x256xbf16> to vector<32x255xbf16>
    %146 = vector.extract_strided_slice %124 {offsets = [0, 0], sizes = [32, 1], strides = [1, 1]} : vector<32x256xbf16> to vector<32x1xbf16>
    %147 = tpu.concatenate %145, %146 in 1 : vector<32x255xbf16>, vector<32x1xbf16> -> vector<32x256xbf16>
    %148 = vector.broadcast %4 : vector<1x256xbf16> to vector<32x256xbf16>
    %149 = arith.mulf %147, %148 : vector<32x256xbf16>
    %150 = vector.extract_strided_slice %124 {offsets = [0, 15], sizes = [32, 241], strides = [1, 1]} : vector<32x256xbf16> to vector<32x241xbf16>
    %151 = vector.extract_strided_slice %124 {offsets = [0, 0], sizes = [32, 15], strides = [1, 1]} : vector<32x256xbf16> to vector<32x15xbf16>
    %152 = tpu.concatenate %150, %151 in 1 : vector<32x241xbf16>, vector<32x15xbf16> -> vector<32x256xbf16>
    %153 = vector.broadcast %5 : vector<1x256xbf16> to vector<32x256xbf16>
    %154 = arith.mulf %152, %153 : vector<32x256xbf16>
    %155 = vector.extract_strided_slice %124 {offsets = [0, 16], sizes = [32, 240], strides = [1, 1]} : vector<32x256xbf16> to vector<32x240xbf16>
    %156 = vector.extract_strided_slice %124 {offsets = [0, 0], sizes = [32, 16], strides = [1, 1]} : vector<32x256xbf16> to vector<32x16xbf16>
    %157 = tpu.concatenate %155, %156 in 1 : vector<32x240xbf16>, vector<32x16xbf16> -> vector<32x256xbf16>
    %158 = vector.broadcast %6 : vector<1x256xbf16> to vector<32x256xbf16>
    %159 = arith.mulf %157, %158 : vector<32x256xbf16>
    %160 = vector.extract_strided_slice %124 {offsets = [0, 17], sizes = [32, 239], strides = [1, 1]} : vector<32x256xbf16> to vector<32x239xbf16>
    %161 = vector.extract_strided_slice %124 {offsets = [0, 0], sizes = [32, 17], strides = [1, 1]} : vector<32x256xbf16> to vector<32x17xbf16>
    %162 = tpu.concatenate %160, %161 in 1 : vector<32x239xbf16>, vector<32x17xbf16> -> vector<32x256xbf16>
    %163 = vector.broadcast %7 : vector<1x256xbf16> to vector<32x256xbf16>
    %164 = arith.mulf %162, %163 : vector<32x256xbf16>
    %165 = tpu.concatenate %129, %134, %139, %144, %124, %149, %154, %159, %164 in 0 : vector<32x256xbf16>, vector<32x256xbf16>, vector<32x256xbf16>, vector<32x256xbf16>, vector<32x256xbf16>, vector<32x256xbf16>, vector<32x256xbf16>, vector<32x256xbf16>, vector<32x256xbf16> -> vector<288x256xbf16>
    %cst_33 = arith.constant dense<0.000000e+00> : vector<32x256xf32>
    %166 = tpu.matmul %122, %165, %cst_33 {dimension_numbers = #tpu.dot_dimension_numbers<[1], [0], [0], [1], [0, 0, 1, 1], [], []>} : vector<32x288xbf16>, vector<288x256xbf16>, vector<32x256xf32> -> vector<32x256xf32>
    %167 = vector.broadcast %123 : vector<32x1xf32> to vector<32x256xf32>
    %168 = arith.addf %166, %167 : vector<32x256xf32>
    %c0_34 = arith.constant 0 : index
    %c4 = arith.constant 4 : index
    %169 = vector.load %arg4[%c0_34, %c4] : memref<32x6xf32, #tpu.memory_space<vmem>>, vector<32x1xf32>
    %cst_35 = arith.constant 0.000000e+00 : f32
    %170 = vector.broadcast %cst_35 : f32 to vector<32x256xf32>
    %171 = arith.cmpf oge, %168, %170 : vector<32x256xf32>
    %172 = vector.broadcast %169 : vector<32x1xf32> to vector<32x256xf32>
    %173 = arith.mulf %168, %172 : vector<32x256xf32>
    %174 = arith.select %171, %168, %173 : vector<32x256xi1>, vector<32x256xf32>
    %175 = vector.extract_strided_slice %174 {offsets = [24, 0], sizes = [8, 256], strides = [1, 1]} : vector<32x256xf32> to vector<8x256xf32>
    %c1_36 = arith.constant 1 : index
    %c0_37 = arith.constant 0 : index
    %c0_38 = arith.constant 0 : index
    %176 = vector.load %arg3[%c1_36, %c0_37, %c0_38] : memref<2x8x72xbf16, #tpu.memory_space<vmem>>, vector<1x8x72xbf16>
    %177 = vector.shape_cast %176 : vector<1x8x72xbf16> to vector<8x72xbf16>
    %c0_39 = arith.constant 0 : index
    %c1_40 = arith.constant 1 : index
    %178 = vector.load %arg5[%c0_39, %c1_40] : memref<8x4xf32, #tpu.memory_space<vmem>>, vector<8x1xf32>
    %179 = arith.truncf %175 : vector<8x256xf32> to vector<8x256xbf16>
    %180 = vector.extract_strided_slice %179 {offsets = [0, 239], sizes = [8, 17], strides = [1, 1]} : vector<8x256xbf16> to vector<8x17xbf16>
    %181 = vector.extract_strided_slice %179 {offsets = [0, 0], sizes = [8, 239], strides = [1, 1]} : vector<8x256xbf16> to vector<8x239xbf16>
    %182 = tpu.concatenate %180, %181 in 1 : vector<8x17xbf16>, vector<8x239xbf16> -> vector<8x256xbf16>
    %183 = vector.broadcast %0 : vector<1x256xbf16> to vector<8x256xbf16>
    %184 = arith.mulf %182, %183 : vector<8x256xbf16>
    %185 = vector.extract_strided_slice %179 {offsets = [0, 240], sizes = [8, 16], strides = [1, 1]} : vector<8x256xbf16> to vector<8x16xbf16>
    %186 = vector.extract_strided_slice %179 {offsets = [0, 0], sizes = [8, 240], strides = [1, 1]} : vector<8x256xbf16> to vector<8x240xbf16>
    %187 = tpu.concatenate %185, %186 in 1 : vector<8x16xbf16>, vector<8x240xbf16> -> vector<8x256xbf16>
    %188 = vector.broadcast %1 : vector<1x256xbf16> to vector<8x256xbf16>
    %189 = arith.mulf %187, %188 : vector<8x256xbf16>
    %190 = vector.extract_strided_slice %179 {offsets = [0, 241], sizes = [8, 15], strides = [1, 1]} : vector<8x256xbf16> to vector<8x15xbf16>
    %191 = vector.extract_strided_slice %179 {offsets = [0, 0], sizes = [8, 241], strides = [1, 1]} : vector<8x256xbf16> to vector<8x241xbf16>
    %192 = tpu.concatenate %190, %191 in 1 : vector<8x15xbf16>, vector<8x241xbf16> -> vector<8x256xbf16>
    %193 = vector.broadcast %2 : vector<1x256xbf16> to vector<8x256xbf16>
    %194 = arith.mulf %192, %193 : vector<8x256xbf16>
    %195 = vector.extract_strided_slice %179 {offsets = [0, 255], sizes = [8, 1], strides = [1, 1]} : vector<8x256xbf16> to vector<8x1xbf16>
    %196 = vector.extract_strided_slice %179 {offsets = [0, 0], sizes = [8, 255], strides = [1, 1]} : vector<8x256xbf16> to vector<8x255xbf16>
    %197 = tpu.concatenate %195, %196 in 1 : vector<8x1xbf16>, vector<8x255xbf16> -> vector<8x256xbf16>
    %198 = vector.broadcast %3 : vector<1x256xbf16> to vector<8x256xbf16>
    %199 = arith.mulf %197, %198 : vector<8x256xbf16>
    %200 = vector.extract_strided_slice %179 {offsets = [0, 1], sizes = [8, 255], strides = [1, 1]} : vector<8x256xbf16> to vector<8x255xbf16>
    %201 = vector.extract_strided_slice %179 {offsets = [0, 0], sizes = [8, 1], strides = [1, 1]} : vector<8x256xbf16> to vector<8x1xbf16>
    %202 = tpu.concatenate %200, %201 in 1 : vector<8x255xbf16>, vector<8x1xbf16> -> vector<8x256xbf16>
    %203 = vector.broadcast %4 : vector<1x256xbf16> to vector<8x256xbf16>
    %204 = arith.mulf %202, %203 : vector<8x256xbf16>
    %205 = vector.extract_strided_slice %179 {offsets = [0, 15], sizes = [8, 241], strides = [1, 1]} : vector<8x256xbf16> to vector<8x241xbf16>
    %206 = vector.extract_strided_slice %179 {offsets = [0, 0], sizes = [8, 15], strides = [1, 1]} : vector<8x256xbf16> to vector<8x15xbf16>
    %207 = tpu.concatenate %205, %206 in 1 : vector<8x241xbf16>, vector<8x15xbf16> -> vector<8x256xbf16>
    %208 = vector.broadcast %5 : vector<1x256xbf16> to vector<8x256xbf16>
    %209 = arith.mulf %207, %208 : vector<8x256xbf16>
    %210 = vector.extract_strided_slice %179 {offsets = [0, 16], sizes = [8, 240], strides = [1, 1]} : vector<8x256xbf16> to vector<8x240xbf16>
    %211 = vector.extract_strided_slice %179 {offsets = [0, 0], sizes = [8, 16], strides = [1, 1]} : vector<8x256xbf16> to vector<8x16xbf16>
    %212 = tpu.concatenate %210, %211 in 1 : vector<8x240xbf16>, vector<8x16xbf16> -> vector<8x256xbf16>
    %213 = vector.broadcast %6 : vector<1x256xbf16> to vector<8x256xbf16>
    %214 = arith.mulf %212, %213 : vector<8x256xbf16>
    %215 = vector.extract_strided_slice %179 {offsets = [0, 17], sizes = [8, 239], strides = [1, 1]} : vector<8x256xbf16> to vector<8x239xbf16>
    %216 = vector.extract_strided_slice %179 {offsets = [0, 0], sizes = [8, 17], strides = [1, 1]} : vector<8x256xbf16> to vector<8x17xbf16>
    %217 = tpu.concatenate %215, %216 in 1 : vector<8x239xbf16>, vector<8x17xbf16> -> vector<8x256xbf16>
    %218 = vector.broadcast %7 : vector<1x256xbf16> to vector<8x256xbf16>
    %219 = arith.mulf %217, %218 : vector<8x256xbf16>
    %220 = tpu.concatenate %184, %189, %194, %199, %179, %204, %209, %214, %219 in 0 : vector<8x256xbf16>, vector<8x256xbf16>, vector<8x256xbf16>, vector<8x256xbf16>, vector<8x256xbf16>, vector<8x256xbf16>, vector<8x256xbf16>, vector<8x256xbf16>, vector<8x256xbf16> -> vector<72x256xbf16>
    %cst_41 = arith.constant dense<0.000000e+00> : vector<8x256xf32>
    %221 = tpu.matmul %177, %220, %cst_41 {dimension_numbers = #tpu.dot_dimension_numbers<[1], [0], [0], [1], [0, 0, 1, 1], [], []>} : vector<8x72xbf16>, vector<72x256xbf16>, vector<8x256xf32> -> vector<8x256xf32>
    %222 = vector.broadcast %178 : vector<8x1xf32> to vector<8x256xf32>
    %223 = arith.addf %221, %222 : vector<8x256xf32>
    %c0_42 = arith.constant 0 : index
    %c3_43 = arith.constant 3 : index
    %224 = vector.load %arg5[%c0_42, %c3_43] : memref<8x4xf32, #tpu.memory_space<vmem>>, vector<8x1xf32>
    %cst_44 = arith.constant 0.000000e+00 : f32
    %225 = vector.broadcast %cst_44 : f32 to vector<8x256xf32>
    %226 = arith.cmpf oge, %223, %225 : vector<8x256xf32>
    %227 = vector.broadcast %224 : vector<8x1xf32> to vector<8x256xf32>
    %228 = arith.mulf %223, %227 : vector<8x256xf32>
    %229 = arith.select %226, %223, %228 : vector<8x256xi1>, vector<8x256xf32>
    %230 = vector.extract_strided_slice %174 {offsets = [0, 0], sizes = [24, 256], strides = [1, 1]} : vector<32x256xf32> to vector<24x256xf32>
    %231 = tpu.concatenate %230, %229 in 0 : vector<24x256xf32>, vector<8x256xf32> -> vector<32x256xf32>
    %c2_45 = arith.constant 2 : index
    %c0_46 = arith.constant 0 : index
    %c0_47 = arith.constant 0 : index
    %232 = vector.load %arg2[%c2_45, %c0_46, %c0_47] : memref<3x32x288xbf16, #tpu.memory_space<vmem>>, vector<1x32x288xbf16>
    %233 = vector.shape_cast %232 : vector<1x32x288xbf16> to vector<32x288xbf16>
    %c0_48 = arith.constant 0 : index
    %c2_49 = arith.constant 2 : index
    %234 = vector.load %arg4[%c0_48, %c2_49] : memref<32x6xf32, #tpu.memory_space<vmem>>, vector<32x1xf32>
    %235 = arith.truncf %231 : vector<32x256xf32> to vector<32x256xbf16>
    %236 = vector.extract_strided_slice %235 {offsets = [0, 239], sizes = [32, 17], strides = [1, 1]} : vector<32x256xbf16> to vector<32x17xbf16>
    %237 = vector.extract_strided_slice %235 {offsets = [0, 0], sizes = [32, 239], strides = [1, 1]} : vector<32x256xbf16> to vector<32x239xbf16>
    %238 = tpu.concatenate %236, %237 in 1 : vector<32x17xbf16>, vector<32x239xbf16> -> vector<32x256xbf16>
    %239 = vector.broadcast %0 : vector<1x256xbf16> to vector<32x256xbf16>
    %240 = arith.mulf %238, %239 : vector<32x256xbf16>
    %241 = vector.extract_strided_slice %235 {offsets = [0, 240], sizes = [32, 16], strides = [1, 1]} : vector<32x256xbf16> to vector<32x16xbf16>
    %242 = vector.extract_strided_slice %235 {offsets = [0, 0], sizes = [32, 240], strides = [1, 1]} : vector<32x256xbf16> to vector<32x240xbf16>
    %243 = tpu.concatenate %241, %242 in 1 : vector<32x16xbf16>, vector<32x240xbf16> -> vector<32x256xbf16>
    %244 = vector.broadcast %1 : vector<1x256xbf16> to vector<32x256xbf16>
    %245 = arith.mulf %243, %244 : vector<32x256xbf16>
    %246 = vector.extract_strided_slice %235 {offsets = [0, 241], sizes = [32, 15], strides = [1, 1]} : vector<32x256xbf16> to vector<32x15xbf16>
    %247 = vector.extract_strided_slice %235 {offsets = [0, 0], sizes = [32, 241], strides = [1, 1]} : vector<32x256xbf16> to vector<32x241xbf16>
    %248 = tpu.concatenate %246, %247 in 1 : vector<32x15xbf16>, vector<32x241xbf16> -> vector<32x256xbf16>
    %249 = vector.broadcast %2 : vector<1x256xbf16> to vector<32x256xbf16>
    %250 = arith.mulf %248, %249 : vector<32x256xbf16>
    %251 = vector.extract_strided_slice %235 {offsets = [0, 255], sizes = [32, 1], strides = [1, 1]} : vector<32x256xbf16> to vector<32x1xbf16>
    %252 = vector.extract_strided_slice %235 {offsets = [0, 0], sizes = [32, 255], strides = [1, 1]} : vector<32x256xbf16> to vector<32x255xbf16>
    %253 = tpu.concatenate %251, %252 in 1 : vector<32x1xbf16>, vector<32x255xbf16> -> vector<32x256xbf16>
    %254 = vector.broadcast %3 : vector<1x256xbf16> to vector<32x256xbf16>
    %255 = arith.mulf %253, %254 : vector<32x256xbf16>
    %256 = vector.extract_strided_slice %235 {offsets = [0, 1], sizes = [32, 255], strides = [1, 1]} : vector<32x256xbf16> to vector<32x255xbf16>
    %257 = vector.extract_strided_slice %235 {offsets = [0, 0], sizes = [32, 1], strides = [1, 1]} : vector<32x256xbf16> to vector<32x1xbf16>
    %258 = tpu.concatenate %256, %257 in 1 : vector<32x255xbf16>, vector<32x1xbf16> -> vector<32x256xbf16>
    %259 = vector.broadcast %4 : vector<1x256xbf16> to vector<32x256xbf16>
    %260 = arith.mulf %258, %259 : vector<32x256xbf16>
    %261 = vector.extract_strided_slice %235 {offsets = [0, 15], sizes = [32, 241], strides = [1, 1]} : vector<32x256xbf16> to vector<32x241xbf16>
    %262 = vector.extract_strided_slice %235 {offsets = [0, 0], sizes = [32, 15], strides = [1, 1]} : vector<32x256xbf16> to vector<32x15xbf16>
    %263 = tpu.concatenate %261, %262 in 1 : vector<32x241xbf16>, vector<32x15xbf16> -> vector<32x256xbf16>
    %264 = vector.broadcast %5 : vector<1x256xbf16> to vector<32x256xbf16>
    %265 = arith.mulf %263, %264 : vector<32x256xbf16>
    %266 = vector.extract_strided_slice %235 {offsets = [0, 16], sizes = [32, 240], strides = [1, 1]} : vector<32x256xbf16> to vector<32x240xbf16>
    %267 = vector.extract_strided_slice %235 {offsets = [0, 0], sizes = [32, 16], strides = [1, 1]} : vector<32x256xbf16> to vector<32x16xbf16>
    %268 = tpu.concatenate %266, %267 in 1 : vector<32x240xbf16>, vector<32x16xbf16> -> vector<32x256xbf16>
    %269 = vector.broadcast %6 : vector<1x256xbf16> to vector<32x256xbf16>
    %270 = arith.mulf %268, %269 : vector<32x256xbf16>
    %271 = vector.extract_strided_slice %235 {offsets = [0, 17], sizes = [32, 239], strides = [1, 1]} : vector<32x256xbf16> to vector<32x239xbf16>
    %272 = vector.extract_strided_slice %235 {offsets = [0, 0], sizes = [32, 17], strides = [1, 1]} : vector<32x256xbf16> to vector<32x17xbf16>
    %273 = tpu.concatenate %271, %272 in 1 : vector<32x239xbf16>, vector<32x17xbf16> -> vector<32x256xbf16>
    %274 = vector.broadcast %7 : vector<1x256xbf16> to vector<32x256xbf16>
    %275 = arith.mulf %273, %274 : vector<32x256xbf16>
    %276 = tpu.concatenate %240, %245, %250, %255, %235, %260, %265, %270, %275 in 0 : vector<32x256xbf16>, vector<32x256xbf16>, vector<32x256xbf16>, vector<32x256xbf16>, vector<32x256xbf16>, vector<32x256xbf16>, vector<32x256xbf16>, vector<32x256xbf16>, vector<32x256xbf16> -> vector<288x256xbf16>
    %cst_50 = arith.constant dense<0.000000e+00> : vector<32x256xf32>
    %277 = tpu.matmul %233, %276, %cst_50 {dimension_numbers = #tpu.dot_dimension_numbers<[1], [0], [0], [1], [0, 0, 1, 1], [], []>} : vector<32x288xbf16>, vector<288x256xbf16>, vector<32x256xf32> -> vector<32x256xf32>
    %278 = vector.broadcast %234 : vector<32x1xf32> to vector<32x256xf32>
    %279 = arith.addf %277, %278 : vector<32x256xf32>
    %280 = arith.addf %9, %279 : vector<32x256xf32>
    %c0_51 = arith.constant 0 : index
    %c5_52 = arith.constant 5 : index
    %281 = vector.load %arg4[%c0_51, %c5_52] : memref<32x6xf32, #tpu.memory_space<vmem>>, vector<32x1xf32>
    %cst_53 = arith.constant 0.000000e+00 : f32
    %282 = vector.broadcast %cst_53 : f32 to vector<32x256xf32>
    %283 = arith.cmpf oge, %280, %282 : vector<32x256xf32>
    %284 = vector.broadcast %281 : vector<32x1xf32> to vector<32x256xf32>
    %285 = arith.mulf %280, %284 : vector<32x256xf32>
    %286 = arith.select %283, %280, %285 : vector<32x256xi1>, vector<32x256xf32>
    %c0_54 = arith.constant 0 : index
    %c0_55 = arith.constant 0 : index
    %c0_56 = arith.constant 0 : index
    %287 = vector.load %arg7[%c0_54, %c0_55, %c0_56] : memref<1x32x256xf32, #tpu.memory_space<vmem>>, vector<1x32x256xf32>
    %288 = vector.shape_cast %287 : vector<1x32x256xf32> to vector<32x256xf32>
    %289 = vector.shape_cast %286 : vector<32x256xf32> to vector<1x32x256xf32>
    tpu.vector_store %arg7[%c0_54, %c0_55, %c0_56], %289 {strides = array<i32>} : memref<1x32x256xf32, #tpu.memory_space<vmem>>, vector<1x32x256xf32>,
    return
  }
  func.func @transform_0(%arg0: i32) -> (i32, i32, i32) {
    %c0_i32 = arith.constant 0 : i32
    %c0_i32_0 = arith.constant 0 : i32
    %c0_i32_1 = arith.constant 0 : i32
    return %arg0, %c0_i32, %c0_i32_0 : i32, i32, i32
  }
  func.func @transform_1(%arg0: i32) -> (i32, i32, i32) {
    %c0_i32 = arith.constant 0 : i32
    %c0_i32_0 = arith.constant 0 : i32
    %c0_i32_1 = arith.constant 0 : i32
    %c0_i32_2 = arith.constant 0 : i32
    return %c0_i32, %c0_i32_0, %c0_i32_1 : i32, i32, i32
  }
  func.func @transform_2(%arg0: i32) -> (i32, i32, i32) {
    %c0_i32 = arith.constant 0 : i32
    %c0_i32_0 = arith.constant 0 : i32
    %c0_i32_1 = arith.constant 0 : i32
    %c0_i32_2 = arith.constant 0 : i32
    return %c0_i32, %c0_i32_0, %c0_i32_1 : i32, i32, i32
  }
  func.func @transform_3(%arg0: i32) -> (i32, i32) {
    %c0_i32 = arith.constant 0 : i32
    %c0_i32_0 = arith.constant 0 : i32
    %c0_i32_1 = arith.constant 0 : i32
    return %c0_i32, %c0_i32_0 : i32, i32
  }
  func.func @transform_4(%arg0: i32) -> (i32, i32) {
    %c0_i32 = arith.constant 0 : i32
    %c0_i32_0 = arith.constant 0 : i32
    %c0_i32_1 = arith.constant 0 : i32
    return %c0_i32, %c0_i32_0 : i32, i32
  }
  func.func @transform_5(%arg0: i32) -> (i32, i32) {
    %c0_i32 = arith.constant 0 : i32
    %c0_i32_0 = arith.constant 0 : i32
    %c0_i32_1 = arith.constant 0 : i32
    return %c0_i32, %c0_i32_0 : i32, i32
  }
  func.func @transform_6(%arg0: i32) -> (i32, i32, i32) {
    %c0_i32 = arith.constant 0 : i32
    %c0_i32_0 = arith.constant 0 : i32
    %c0_i32_1 = arith.constant 0 : i32
    return %arg0, %c0_i32, %c0_i32_0 : i32, i32, i32
  }
}

</mosaic_0001>

<bundles_post_ra>
// kernel: resblock_forward.1
= control target key start
LH: loop header
LB: loop body
LE: loop exit
PB: predicated region body
PF: predicated region fallthrough
CT: control target
= control target key end

     0   :  { %s2411_s21 = smov 0   ;;  %s3307_s0 = inlined_call_operand.vmem [shape: f32[2,32,256], index: 0, kind: input, shape index: {}]   ;;  %s3308_s1 = inlined_call_operand.vmem [shape: bf16[3,32,288], index: 1, kind: input, shape index: {}]   ;;  %s3309_s2 = inlined_call_operand.vmem [shape: bf16[2,8,72], index: 2, kind: input, shape index: {}]   ;;  %s3310_s3 = inlined_call_operand.vmem [shape: f32[32,6], index: 3, kind: input, shape index: {}]   ;;  %s3311_s4 = inlined_call_operand.vmem [shape: f32[8,4], index: 4, kind: input, shape index: {}]   ;;  %s3312_s5 = inlined_call_operand.vmem [shape: bf16[9,256], index: 5, kind: input, shape index: {}]   ;;  %s3313_s6 = inlined_call_operand.vmem [shape: f32[2,32,256], index: 6, kind: output, shape index: {}]  }
   0x1 LB: > { %s2152_s22 = sadd.s32 4294967295, %s2360_s21   ;;  %p2156_p0 = scmp.ge.s32.totalorder %s2360_s21, 1  ;;  %s2360_s21 = sphi %s2411_s21, %s16_s21  }
   0x2   : > { %p212_p1 = scmp.lt.s32.totalorder %s2360_s21, 3 }
   0x4   : > { %p213_p2 = pnand %p2156_p0, %p212_p1 }
   0x5   : > { %p242_p3 = scmp.lt.s32.totalorder (!%p213_p2), %s2152_s22, 1  ;;  %s2362_s27 = smov (!%p213_p2), 17   ;;  %v2320_v12 = vld [vmem:[%s3308_s1 + $0x4] ss:$12 sps:$4 sm:$0xff] (!%p213_p2)   ;;  %v2370_v13 = vmov (!%p213_p2), 0   ;;  %v2517_v14 = vld [vmem:[%s3310_s3 + $0x18] sm:$0xff] (!%p213_p2)  ;;  %v316_v16 = vlaneseq (!%p213_p2) }
   0x6   : > { %216 = sbr.rel (%p213_p2) target bundleno = 2013 (0x7dd), region = 44  ;;  %s2363_s28 = smov (!%p213_p2), 16   ;;  %775 = vmatprep.mubr.bf16.mxu1 (!%p213_p2), %v2370_v13  ;;  %722 = vmatprep.mubr.bf16.mxu0 (!%p213_p2), %v2320_v12  ;;  %v2371_v15 = vmov (!%p213_p2), 3   ;;  %v253_v17 = vld [vmem:[%s3312_s5] sm:$0x11] (!%p213_p2)  ;;  %vm294_vm0 = vcmask (!%p213_p2), 138240  }
   0x7   : > { %s2364_s29 = smov (!%p213_p2), 15   ;;  %s2365_s30 = smov (!%p213_p2), 1   ;;  %2290 = vset.pattern.permute.xlu0 (!%p213_p2), %v2370_v13  ;;  %2291 = vset.pattern.permute.xlu1 (!%p213_p2), %v2371_v15  ;;  %v2162_v18 = vcombine.high (!%p213_p2), %v253_v17, %v253_v17  ;;  %v2526_v19 = vshrl.u32 (!%p213_p2), %v316_v16, 7  ;;  %v2161_v20 = vcombine.low (!%p213_p2), %v253_v17, %v253_v17  ;;  %v254_v32 = vld [vmem:[%s3312_s5] sm:$0x22] (!%p213_p2)  ;;  %vm339_vm1 = vcmask (!%p213_p2), 130048  }
   0x8   : > { %s2366_s7 = smov (!%p213_p2), 127   ;;  %s2367_s8 = smov (!%p213_p2), 113   ;;  %v2164_v41 = vcombine.high (!%p213_p2), %v254_v32, %v254_v32  ;;  %v2163_v48 = vcombine.low (!%p213_p2), %v254_v32, %v254_v32  ;;  %vm379_vm2 = vcmask (!%p213_p2), 121856   ;;  %vm424_vm3 = vcmask (!%p213_p2), 7168   ;;  %v255_v32 = vld [vmem:[%s3312_s5] sm:$0x44] (!%p213_p2) }
   0x9   : > { %s2368_s9 = smov (!%p213_p2), 112   ;;  %s2369_s10 = smov (!%p213_p2), 111   ;;  %v2529_v21 = vsub.s32 (!%p213_p2), 0, %v2526_v19  ;;  %v321_v22 = vpack.i.b16 (!%p213_p2), %v2162_v18, %v2162_v18  ;;  %v360_v23 = vshrl.u32 (!%p213_p2), %v2162_v18, 16  ;;  %v314_v24 = vpack.i.b16 (!%p213_p2), %v2161_v20, %v2161_v20 }
   0xa   : > { %v353_v27 = vshrl.u32 (!%p213_p2), %v2161_v20, 16  ;;  %v403_v51 = vsub.s32 (!%p213_p2), 1, %v2526_v19  ;;  %v406_v52 = vpack.i.b16 (!%p213_p2), %v2164_v41, %v2164_v41  ;;  %v399_v58 = vpack.i.b16 (!%p213_p2), %v2163_v48, %v2163_v48 }
   0xb   : > { %v2532_v28 = vrot.slane (!%p213_p2), %v321_v22, %v2529_v21  ;;  %v2535_v29 = vrot.slane (!%p213_p2), %v314_v24, %v2529_v21  ;;  %v361_v30 = vpack.i.b16 (!%p213_p2), %v360_v23, %v360_v23  ;;  %v445_v62 = vshrl.u32 (!%p213_p2), %v2164_v41, 16 }
   0xc   : > { %v354_v37 = vpack.i.b16 (!%p213_p2), %v353_v27, %v353_v27  ;;  %v2562_v61 = vrot.slane (!%p213_p2), %v406_v52, %v403_v51  ;;  %v489_v52 = vsub.s32 (!%p213_p2), 2, %v2526_v19  ;;  %vm464_vm4 = vcmask (!%p213_p2), 1039360  }
   0xd   : > { %s3315_s22 = smov (!%p242_p3, %s2152_s22), 1  ;;  %v2546_v40 = vrot.slane %v361_v30, %v2529_v21  ;;  %vm511_vm5 = vcmask 924672   ;;  %vm596_vm6 = vcmask 908288   ;;  %vm556_vm7 = vcmask 916480  }
   0xe   : > { %s2218_s23 = sshll.u32 %s3315_s22, 6  ;;  %v2552_v47 = vrot.slane %v354_v37, %v2529_v21  ;;  %v2166_v37 = vcombine.high %v255_v32, %v255_v32  ;;  %vm683_vm8 = vcmask 261120   ;;  %vm954_vm11 = vcmask 1043456  }
   0xf   : > { %s2427_s26 = scalar_lea.vmem %s3307_s0, %s2218_s23  ;;  %vm992_vm12 = vcmask 588800  }
  0x10   : > { %v263_v0 = vld [vmem:[%s2427_s26 + $0x28] sm:$0xff]  ;;  %v265_v1 = vld [vmem:[%s2427_s26 + $0x38] sm:$0xff]  ;;  %v262_v5 = vld [vmem:[%s2427_s26 + $0x20] sm:$0xff] }
  0x11   : > { %v259_v2 = vld [vmem:[%s2427_s26 + $0x8] sm:$0xff]  ;;  %v2432_v3 = vpack.c.bf16 %v265_v1, %v263_v0  ;;  %v261_v4 = vld [vmem:[%s2427_s26 + $0x18] sm:$0xff]  ;;  %v264_v6 = vld [vmem:[%s2427_s26 + $0x30] sm:$0xff] }
  0x12   : > { %v2437_v7 = vpack.c.bf16 %v261_v4, %v259_v2  ;;  %v258_v8 = vld [vmem:[%s2427_s26] sm:$0xff]  ;;  %v260_v9 = vld [vmem:[%s2427_s26 + $0x10] sm:$0xff]  ;;  %v2443_v10 = vpack.c.bf16 %v264_v6, %v262_v5  ;;  %v2566_v4 = vrot.slane %v399_v58, %v403_v51  ;;  %v438_v5 = vshrl.u32 %v2163_v48, 16 }
  0x13   : > { %286 = vrot.lane.b32.xlu1 %v2432_v3, %s2362_s27  ;;  %v2447_v11 = vpack.c.bf16 %v260_v9, %v258_v8  ;;  %v446_v9 = vpack.i.b16 %v445_v62, %v445_v62 }
  0x14   : > { %284 = vrot.lane.b32.xlu0 %v2437_v7, %s2362_s27  ;;  %v439_v20 = vpack.i.b16 %v438_v5, %v438_v5 }
  0x15   : > { %v2574_v24 = vrot.slane %v446_v9, %v403_v51  ;;  %v535_v9 = vsub.s32 3, %v2526_v19 }
  0x17   : > { %292 = vrot.lane.b32.xlu1 %v2443_v10, %s2362_s27 }
  0x18   : > { %290 = vrot.lane.b32.xlu0 %v2447_v11, %s2362_s27 }
  0x1b   : > { %335 = vrot.lane.b32.xlu1 %v2447_v11, %s2363_s28 }
  0x1c   : > { %331 = vrot.lane.b32.xlu0 %v2437_v7, %s2363_s28 }
  0x1f   : > { %337 = vrot.lane.b32.xlu1 %v2443_v10, %s2363_s28 }
  0x20   : > { %333 = vrot.lane.b32.xlu0 %v2432_v3, %s2363_s28 }
  0x23   : > { %375 = vrot.lane.b32.xlu1 %v2447_v11, %s2364_s29 }
  0x24   : > { %371 = vrot.lane.b32.xlu0 %v2437_v7, %s2364_s29 }
  0x27   : > { %377 = vrot.lane.b32.xlu1 %v2443_v10, %s2364_s29 }
  0x28   : > { %373 = vrot.lane.b32.xlu0 %v2432_v3, %s2364_s29 }
  0x2b   : > { %420 = vrot.lane.b32.xlu1 %v2447_v11, %s2365_s30 }
  0x2c   : > { %416 = vrot.lane.b32.xlu0 %v2437_v7, %s2365_s30 }
  0x2f   : > { %422 = vrot.lane.b32.xlu1 %v2443_v10, %s2365_s30 }
  0x30   : > { %418 = vrot.lane.b32.xlu0 %v2432_v3, %s2365_s30 }
  0x33   : > { %458 = vrot.lane.b32.xlu1 %v2437_v7, %s2366_s7 }
  0x34   : > { %456 = vrot.lane.b32.xlu0 %v2447_v11, %s2366_s7 }
  0x37   : > { %462 = vrot.lane.b32.xlu1 %v2432_v3, %s2366_s7 }
  0x38   : > { %460 = vrot.lane.b32.xlu0 %v2443_v10, %s2366_s7 }
  0x3b   : > { %505 = vrot.lane.b32.xlu1 %v2437_v7, %s2367_s8 }
  0x3c   : > { %503 = vrot.lane.b32.xlu0 %v2447_v11, %s2367_s8 }
  0x3f   : > { %509 = vrot.lane.b32.xlu1 %v2432_v3, %s2367_s8 }
  0x40   : > { %507 = vrot.lane.b32.xlu0 %v2443_v10, %s2367_s8 }
  0x43   : > { %550 = vrot.lane.b32.xlu1 %v2437_v7, %s2368_s9 }
  0x44   : > { %548 = vrot.lane.b32.xlu0 %v2447_v11, %s2368_s9 }
  0x47   : > { %590 = vrot.lane.b32.xlu1 %v2437_v7, %s2369_s10 }
  0x48   : > { %588 = vrot.lane.b32.xlu0 %v2447_v11, %s2369_s10 }
  0x4b   : > { %554 = vrot.lane.b32.xlu1 %v2432_v3, %s2368_s9 }
  0x4c   : > { %552 = vrot.lane.b32.xlu0 %v2443_v10, %s2368_s9 }
  0x4f   : > { %594 = vrot.lane.b32.xlu1 %v2432_v3, %s2369_s10 }
  0x50   : > { %592 = vrot.lane.b32.xlu0 %v2443_v10, %s2369_s10 }
  0x53   : > { %817 = vperm.xlu1 %2291, %v2517_v14  }
  0x54   : > { %650 = vperm.xlu0 %2290, %v2517_v14  }
  0x57   : > { %2292 = vset.pattern.permute.xlu1 %v2370_v13 }
  0x85   : > { %v287_v25 = vpop.permute.xlu1 %286 }
  0x86   : > { %v285_v26 = vpop.permute.xlu0 %284 }
  0x89   : > { %v293_v31 = vpop.permute.xlu1 %292 }
  0x8a   : > { %v291_v33 = vpop.permute.xlu0 %290  ;;  %v296_v34 = vsel %vm294_vm0, %v293_v31, %v287_v25  ;;  %v306_v43 = vsel %vm294_vm0, %v287_v25, %v293_v31  ;;  %v2578_v31 = vrot.slane %v439_v20, %v403_v51 }
  0x8b   : > { %v295_v35 = vsel %vm294_vm0, %v291_v33, %v285_v26  ;;  %v302_v36 = vsel %vm294_vm0, %v285_v26, %v291_v33  ;;  %v330_v44 = vmul.bf16 %v2532_v28, %v296_v34  ;;  %v329_v53 = vmul.bf16 %v2535_v29, %v306_v43 }
  0x8c   : > { %v328_v38 = vmul.bf16 %v2532_v28, %v295_v35  ;;  %v327_v39 = vmul.bf16 %v2535_v29, %v302_v36 }
  0x8d   : > { %v336_v42 = vpop.permute.xlu1 %335 }
  0x8e   : > { %690 = vmatprep.subr.bf16.mxu0 %v328_v38  ;;  %v332_v45 = vpop.permute.xlu0 %331 }
  0x8f   : > { %691 = vmatpush1.bf16.msra.mxu0 %v327_v39  ;;  %v340_v46 = vsel %vm339_vm1, %v336_v42, %v332_v45  ;;  %v347_v49 = vsel %vm339_vm1, %v332_v45, %v336_v42 }
  0x90   : > { %692 = vmatprep.subr.bf16.mxu0 %v330_v44  ;;  %v368_v50 = vmul.bf16 %v2546_v40, %v340_v46  ;;  %v367_v57 = vmul.bf16 %v2552_v47, %v347_v49  ;;  %v2165_v44 = vcombine.low %v255_v32, %v255_v32  ;;  %v492_v46 = vshrl.u32 %v2166_v37, 16 }
  0x91   : > { %v338_v54 = vpop.permute.xlu1 %337 }
  0x92   : > { %v334_v55 = vpop.permute.xlu0 %333 }
  0x93   : > { %693 = vmatpush1.bf16.msra.mxu0 %v329_v53  ;;  %v341_v56 = vsel %vm339_vm1, %v338_v54, %v334_v55  ;;  %v351_v59 = vsel %vm339_vm1, %v334_v55, %v338_v54  ;;  %v493_v53 = vpack.i.b16 %v492_v46, %v492_v46  ;;  %v256_v54 = vld [vmem:[%s3312_s5] sm:$0x88] }
  0x94   : > { %694 = vmatprep.subr.bf16.mxu0 %v368_v50  ;;  %v370_v60 = vmul.bf16 %v2546_v40, %v341_v56  ;;  %v369_v2 = vmul.bf16 %v2552_v47, %v351_v59  ;;  %v484_v50 = vshrl.u32 %v2165_v44, 16 }
  0x95   : > { %v376_v63 = vpop.permute.xlu1 %375  ;;  %v2598_v59 = vrot.slane %v493_v53, %v489_v52 }
  0x96   : > { %v372_v0 = vpop.permute.xlu0 %371  ;;  %v485_v56 = vpack.i.b16 %v484_v50, %v484_v50 }
  0x97   : > { %695 = vmatpush1.bf16.msra.mxu0 %v367_v57  ;;  %v380_v1 = vsel %vm379_vm2, %v376_v63, %v372_v0  ;;  %v387_v6 = vsel %vm379_vm2, %v372_v0, %v376_v63  ;;  %v257_v57 = vld [vmem:[%s3312_s5 + $0x8] sm:$0x11] }
  0x98   : > { %696 = vmatprep.subr.bf16.mxu0 %v370_v60  ;;  %v413_v8 = vmul.bf16 %v2562_v61, %v380_v1  ;;  %v412_v18 = vmul.bf16 %v2566_v4, %v387_v6  ;;  %v2168_v60 = vcombine.high %v256_v54, %v256_v54  ;;  %v2170_v63 = vcombine.high %v257_v57, %v257_v57 }
  0x99   : > { %v378_v12 = vpop.permute.xlu1 %377  ;;  %v2169_v0 = vcombine.low %v257_v57, %v257_v57 }
  0x9a   : > { %v374_v16 = vpop.permute.xlu0 %373  ;;  %v577_v19 = vshrl.u32 %v2168_v60, 16 }
  0x9b   : > { %697 = vmatpush1.bf16.msra.mxu0 %v369_v2  ;;  %v381_v17 = vsel %vm379_vm2, %v378_v12, %v374_v16  ;;  %v391_v22 = vsel %vm379_vm2, %v374_v16, %v378_v12  ;;  %v2167_v2 = vcombine.low %v256_v54, %v256_v54  ;;  %v538_v12 = vpack.i.b16 %v2168_v60, %v2168_v60 }
  0x9c   : > { %698 = vmatprep.subr.bf16.mxu0 %v413_v8  ;;  %v415_v23 = vmul.bf16 %v2562_v61, %v381_v17  ;;  %v414_v30 = vmul.bf16 %v2566_v4, %v391_v22 }
  0x9d   : > { %v421_v25 = vpop.permute.xlu1 %420  ;;  %v531_v20 = vpack.i.b16 %v2167_v2, %v2167_v2 }
  0x9e   : > { %v417_v26 = vpop.permute.xlu0 %416 }
  0x9f   : > { %699 = vmatpush1.bf16.msra.mxu0 %v412_v18  ;;  %v425_v27 = vsel %vm424_vm3, %v421_v25, %v417_v26  ;;  %v432_v33 = vsel %vm424_vm3, %v417_v26, %v421_v25  ;;  %v2613_v26 = vrot.slane %v538_v12, %v535_v9 }
  0xa0   : > { %700 = vmatprep.subr.bf16.mxu0 %v415_v23  ;;  %v453_v34 = vmul.bf16 %v2574_v24, %v425_v27  ;;  %v452_v39 = vmul.bf16 %v2578_v31, %v432_v33 }
  0xa1   : > { %v423_v35 = vpop.permute.xlu1 %422 }
  0xa2   : > { %v419_v36 = vpop.permute.xlu0 %418 }
  0xa3   : > { %701 = vmatpush1.bf16.msra.mxu0 %v414_v30  ;;  %v426_v38 = vsel %vm424_vm3, %v423_v35, %v419_v36  ;;  %v436_v41 = vsel %vm424_vm3, %v419_v36, %v423_v35  ;;  %v570_v35 = vshrl.u32 %v2167_v2, 16 }
  0xa4   : > { %702 = vmatprep.subr.bf16.mxu0 %v453_v34  ;;  %v455_v42 = vmul.bf16 %v2574_v24, %v426_v38  ;;  %v454_v48 = vmul.bf16 %v2578_v31, %v436_v41  ;;  %v2623_v34 = vrot.slane %v531_v20, %v535_v9 }
  0xa5   : > { %v459_v43 = vpop.permute.xlu1 %458 }
  0xa6   : > { %v457_v45 = vpop.permute.xlu0 %456 }
  0xa7   : > { %703 = vmatpush1.bf16.msra.mxu0 %v452_v39  ;;  %v472_v62 = vsel %vm464_vm4, %v459_v43, %v457_v45  ;;  %v465_v5 = vsel %vm464_vm4, %v457_v45, %v459_v43  ;;  %v578_v39 = vpack.i.b16 %v577_v19, %v577_v19 }
  0xa8   : > { %704 = vmatprep.subr.bf16.mxu0 %v455_v42  ;;  %v500_v6 = vmul.bf16 %v2598_v59, %v472_v62 }
  0xa9   : > { %v463_v49 = vpop.permute.xlu1 %462 }
  0xaa   : > { %v461_v51 = vpop.permute.xlu0 %460 }
  0xab   : > { %705 = vmatpush1.bf16.msra.mxu0 %v454_v48  ;;  %v476_v16 = vsel %vm464_vm4, %v463_v49, %v461_v51  ;;  %v466_v22 = vsel %vm464_vm4, %v461_v51, %v463_v49  ;;  %v571_v48 = vpack.i.b16 %v570_v35, %v570_v35 }
  0xac   : > { %706 = vmatprep.subr.bf16.mxu0 %v2437_v7  ;;  %v2603_v7 = vrot.slane %v485_v56, %v489_v52  ;;  %v502_v23 = vmul.bf16 %v2598_v59, %v476_v16  ;;  %v2635_v52 = vrot.slane %v578_v39, %v535_v9  ;;  %v2318_v16 = vld [vmem:[%s3308_s1] ss:$12 sps:$4 sm:$0xff]  }
  0xad   : > { %v506_v55 = vpop.permute.xlu1 %505  ;;  %v2640_v57 = vrot.slane %v571_v48, %v535_v9  ;;  %v2321_v9 = vld [vmem:[%s3308_s1 + $0x8] ss:$12 sps:$4 sm:$0xff]  }
  0xae   : > { %v504_v58 = vpop.permute.xlu0 %503  ;;  %v499_v17 = vmul.bf16 %v2603_v7, %v465_v5  ;;  %v501_v32 = vmul.bf16 %v2603_v7, %v466_v22 }
  0xaf   : > { %707 = vmatpush1.bf16.msra.mxu0 %v2447_v11  ;;  %v616_v11 = vpack.i.b16 %v2169_v0, %v2169_v0  ;;  %v519_v27 = vsel %vm511_vm5, %v506_v55, %v504_v58  ;;  %v512_v36 = vsel %vm511_vm5, %v504_v58, %v506_v55 }
  0xb0   : > { %708 = vmatprep.subr.bf16.mxu0 %v2432_v3  ;;  %v623_v3 = vpack.i.b16 %v2170_v63, %v2170_v63  ;;  %v545_v37 = vmul.bf16 %v2613_v26, %v519_v27  ;;  %v544_v45 = vmul.bf16 %v2623_v34, %v512_v36 }
  0xb1   : > { %v510_v1 = vpop.permute.xlu1 %509  ;;  %v2620_v30 = vrot.slane %v616_v11, %v2529_v21  ;;  %v2324_v11 = vld [vmem:[%s3308_s1 + $0x20] ss:$12 sps:$4 sm:$0xff]  }
  0xb2   : > { %v508_v8 = vpop.permute.xlu0 %507 }
  0xb3   : > { %709 = vmatpush1.bf16.msra.mxu0 %v2443_v10  ;;  %v2617_v10 = vrot.slane %v623_v3, %v2529_v21  ;;  %v523_v41 = vsel %vm511_vm5, %v510_v1, %v508_v8  ;;  %v513_v49 = vsel %vm511_vm5, %v508_v8, %v510_v1  ;;  %v2322_v3 = vld [vmem:[%s3308_s1 + $0x1c] ss:$12 sps:$4 sm:$0xff]  }
  0xb4   : > { %710 = vmatprep.subr.bf16.mxu0 %v500_v6  ;;  %v547_v50 = vmul.bf16 %v2613_v26, %v523_v41  ;;  %v546_v55 = vmul.bf16 %v2623_v34, %v513_v49 }
  0xb5   : > { %v551_v18 = vpop.permute.xlu1 %550 }
  0xb6   : > { %v549_v25 = vpop.permute.xlu0 %548 }
  0xb7   : > { %711 = vmatpush1.bf16.msra.mxu0 %v499_v17  ;;  %v564_v53 = vsel %vm556_vm7, %v551_v18, %v549_v25  ;;  %v557_v58 = vsel %vm556_vm7, %v549_v25, %v551_v18  ;;  %v2325_v17 = vld [vmem:[%s3308_s1 + $0x18] ss:$12 sps:$4 sm:$0xff]  }
  0xb8   : > { %712 = vmatprep.subr.bf16.mxu0 %v502_v23  ;;  %v585_v60 = vmul.bf16 %v2635_v52, %v564_v53  ;;  %v584_v6 = vmul.bf16 %v2640_v57, %v557_v58  ;;  %v2739_v58 = vld [vmem:[%s3310_s3 + $0x8] sm:$0xff] }
  0xb9   : > { %v591_v33 = vpop.permute.xlu1 %590 }
  0xba   : > { %v589_v38 = vpop.permute.xlu0 %588 }
  0xbb   : > { %713 = vmatpush1.bf16.msra.mxu0 %v501_v32  ;;  %v604_v42 = vsel %vm596_vm6, %v591_v33, %v589_v38  ;;  %v597_v21 = vsel %vm596_vm6, %v589_v38, %v591_v33 }
  0xbc   : > { %714 = vmatprep.subr.bf16.mxu0 %v545_v37  ;;  %v630_v43 = vmul.bf16 %v2617_v10, %v604_v42  ;;  %v629_v44 = vmul.bf16 %v2620_v30, %v597_v21 }
  0xbd   : > { %v555_v46 = vpop.permute.xlu1 %554 }
  0xbe   : > { %v553_v51 = vpop.permute.xlu0 %552  ;;  %743 = vmatprep.subr.bf16.mxu1 %v630_v43 }
  0xbf   : > { %715 = vmatpush1.bf16.msra.mxu0 %v544_v45  ;;  %744 = vmatpush1.bf16.msra.mxu1 %v629_v44  ;;  %v568_v54 = vsel %vm556_vm7, %v555_v46, %v553_v51  ;;  %v558_v8 = vsel %vm556_vm7, %v553_v51, %v555_v46 }
  0xc0   : > { %716 = vmatprep.subr.bf16.mxu0 %v547_v50  ;;  %v587_v1 = vmul.bf16 %v2635_v52, %v568_v54  ;;  %v586_v12 = vmul.bf16 %v2640_v57, %v558_v8 }
  0xc1   : > { %v595_v56 = vpop.permute.xlu1 %594 }
  0xc2   : > { %v593_v62 = vpop.permute.xlu0 %592 }
  0xc3   : > { %717 = vmatpush1.bf16.msra.mxu0 %v546_v55  ;;  %v598_v63 = vsel %vm596_vm6, %v593_v62, %v595_v56  ;;  %v608_v0 = vsel %vm596_vm6, %v595_v56, %v593_v62  ;;  %v2734_v56 = vld [vmem:[%s3310_s3] sm:$0xff] }
  0xc4   : > { %718 = vmatprep.subr.bf16.mxu0 %v585_v60  ;;  %v632_v2 = vmul.bf16 %v2617_v10, %v608_v0  ;;  %v631_v5 = vmul.bf16 %v2620_v30, %v598_v63  ;;  %v2746_v60 = vld [vmem:[%s3310_s3 + $0x10] sm:$0xff]  ;;  %v2757_v62 = vld [vmem:[%s3311_s4] sm:$0xff]  ;;  %v2372_v63 = vmov 2  }
  0xc6   : > { %745 = vmatprep.subr.bf16.mxu1 %v632_v2 }
  0xc7   : > { %719 = vmatpush1.bf16.msra.mxu0 %v584_v6  ;;  %746 = vmatpush1.bf16.msra.mxu1 %v631_v5 }
  0xc8   : > { %720 = vmatprep.subr.bf16.mxu0 %v587_v1 }
  0xca   : > { %2177 = vmatmul.mubr.msk.bf16.vlgmr.msra.gmra.mrb[0].mxu1 %vm683_vm8, %v2321_v9 }
  0xcb   : > { %721 = vmatpush1.bf16.msra.mxu0 %v586_v12  ;;  %785 = vmatprep.mubr.bf16.mxu1 %v2370_v13 }
  0xce   : > { %723 = vmatmul.mubr.bf16.vlgmr.msra.gmra.mrb[0].mxu0 %v2318_v16 }
  0xcf   : > { %732 = vmatprep.mubr.bf16.mxu0 %v2322_v3 }
  0xd2   : > { %2178 = vmatmul.mubr.msk.bf16.gmra.mrb[4].mxu1 %vm683_vm8, %v2324_v11  ;;  %v818_v45 = vpop.permute.xlu1 %817 }
  0xd3   : > { %1034 = vmatprep.mubr.bf16.mxu1 %v2370_v13  ;;  %v651_v39 = vpop.permute.xlu0 %650 }
  0xd6   : > { %733 = vmatmul.mubr.bf16.gmra.mrb[4].mxu0 %v2325_v17 }
 0x19d   : > { %v2671_v18 = vpop.f32.mrb[0].mxu1 }
 0x19e   : > { %v2673_v20 = vpop.f32.mrb[1].mxu1 }
 0x19f   : > { %v2675_v22 = vpop.f32.mrb[2].mxu1 }
 0x1a0   : > { %v2677_v23 = vpop.f32.mrb[3].mxu1 }
 0x1a1   : > { %v2679_v25 = vpop.f32.mrb[0].mxu0 }
 0x1a2   : > { %v2681_v19 = vpop.f32.mrb[1].mxu0 }
 0x1a3   : > { %v2683_v27 = vpop.f32.mrb[2].mxu0 }
 0x1a4   : > { %v2685_v32 = vpop.f32.mrb[3].mxu0 }
 0x1a5   : > { %v2687_v33 = vpop.f32.mrb[4].mxu1 }
 0x1a6   : > { %v2689_v35 = vpop.f32.mrb[5].mxu1 }
 0x1a7   : > { %v791_v36 = vpop.f32.mrb[6].mxu1 }
 0x1a8   : > { %v793_v37 = vpop.f32.mrb[7].mxu1 }
 0x1a9   : > { %v2691_v38 = vpop.f32.mrb[4].mxu0 }
 0x1aa   : > { %v2693_v41 = vpop.f32.mrb[5].mxu0 }
 0x1ab   : > { %v738_v42 = vpop.f32.mrb[6].mxu0 }
 0x1ac   : > { %v739_v21 = vadd.f32 %v738_v42, %v651_v39  ;;  %v740_v43 = vpop.f32.mrb[7].mxu0 }
 0x1ad   : > { %v741_v44 = vadd.f32 %v740_v43, %v651_v39 }
 0x1ae   : > { %v792_v46 = vadd.f32 %v791_v36, %v739_v21 }
 0x1af   : > { %v794_v48 = vadd.f32 %v793_v37, %v741_v44 }
 0x1b0   : > { %vm802_vm9 = vcmp.ge.f32.partialorder %v792_v46, 0.0  ;;  %v826_v49 = vmul.f32 %v818_v45, %v792_v46 }
 0x1b1   : > { %vm803_vm10 = vcmp.ge.f32.partialorder %v794_v48, 0.0  ;;  %v827_v50 = vmul.f32 %v818_v45, %v794_v48 }
 0x1b2   : > { %v834_v51 = vsel %vm802_vm9, %v792_v46, %v826_v49 }
 0x1b3   : > { %v2695_v53 = vpack.c.bf16 %v834_v51, %v834_v51  ;;  %v835_v54 = vsel %vm803_vm10, %v794_v48, %v827_v50 }
 0x1b4   : > { %v2701_v55 = vpack.c.bf16 %v835_v54, %v835_v54 }
 0x1b5   : > { %890 = vrot.lane.b32.xlu1 %v2695_v53, %s2366_s7  ;;  %856 = vrot.lane.b32.xlu0 %v2695_v53, %s2363_s28 }
 0x1b9   : > { %854 = vrot.lane.b32.xlu1 %v2701_v55, %s2363_s28  ;;  %844 = vrot.lane.b32.xlu0 %v2695_v53, %s2362_s27 }
 0x1bd   : > { %841 = vrot.lane.b32.xlu1 %v2701_v55, %s2362_s27  ;;  %880 = vrot.lane.b32.xlu0 %v2695_v53, %s2365_s30 }
 0x1c1   : > { %878 = vrot.lane.b32.xlu1 %v2701_v55, %s2365_s30  ;;  %868 = vrot.lane.b32.xlu0 %v2695_v53, %s2364_s29 }
 0x1c5   : > { %866 = vrot.lane.b32.xlu1 %v2701_v55, %s2364_s29  ;;  %892 = vrot.lane.b32.xlu0 %v2701_v55, %s2366_s7 }
 0x1c9   : > { %914 = vrot.lane.b32.xlu1 %v2695_v53, %s2368_s9  ;;  %916 = vrot.lane.b32.xlu0 %v2701_v55, %s2368_s9 }
 0x1cd   : > { %902 = vrot.lane.b32.xlu1 %v2695_v53, %s2367_s8  ;;  %904 = vrot.lane.b32.xlu0 %v2701_v55, %s2367_s8 }
 0x1d1   : > { %926 = vrot.lane.b32.xlu1 %v2695_v53, %s2369_s10  ;;  %928 = vrot.lane.b32.xlu0 %v2701_v55, %s2369_s10 }
 0x1d5   : > { %635 = vperm.xlu1 %2292, %v2734_v56   ;;  %640 = vperm.xlu0 %2290, %v2739_v58  }
 0x1d9   : > { %645 = vperm.xlu1 %2292, %v2746_v60   ;;  %2293 = vset.pattern.permute.xlu0 %v2371_v15 }
 0x1da   : > { %805 = vperm.xlu0 %2293, %v2734_v56  }
 0x1dd   : > { %2294 = vset.pattern.permute.xlu1 %v2371_v15 }
 0x1de   : > { %809 = vperm.xlu1 %2294, %v2739_v58   ;;  %813 = vperm.xlu0 %2293, %v2746_v60  }
 0x1e2   : > { %2295 = vset.pattern.permute.xlu1 %v2370_v13 }
 0x1e3   : > { %989 = vperm.xlu1 %2295, %v2757_v62  }
 0x1e7   : > { %2296 = vset.pattern.permute.xlu1 %v2372_v63 }
 0x1e8   : > { %1046 = vperm.xlu1 %2296, %v2757_v62  }
 0x227   : > { %v891_v0 = vpop.permute.xlu1 %890  ;;  %v857_v1 = vpop.permute.xlu0 %856 }
 0x22b   : > { %v855_v2 = vpop.permute.xlu1 %854  ;;  %v845_v5 = vpop.permute.xlu0 %844 }
 0x22c   : > { %v858_v6 = vsel %vm339_vm1, %v857_v1, %v855_v2  ;;  %v862_v8 = vsel %vm339_vm1, %v855_v2, %v857_v1 }
 0x22d   : > { %v864_v9 = vmul.bf16 %v862_v8, %v2552_v47  ;;  %v865_v12 = vmul.bf16 %v858_v6, %v2546_v40 }
 0x22f   : > { %v842_v16 = vpop.permute.xlu1 %841  ;;  %v881_v3 = vpop.permute.xlu0 %880  ;;  %v940_v36 = vrot.slane %v864_v9, 4  ;;  %v941_v37 = vrot.slane %v865_v12, 4 }
 0x230   : > { %v846_v11 = vsel %vm294_vm0, %v845_v5, %v842_v16  ;;  %v850_v17 = vsel %vm294_vm0, %v842_v16, %v845_v5 }
 0x231   : > { %v852_v39 = vmul.bf16 %v850_v17, %v2535_v29  ;;  %v853_v42 = vmul.bf16 %v846_v11, %v2532_v28 }
 0x233   : > { %v879_v21 = vpop.permute.xlu1 %878  ;;  %v869_v43 = vpop.permute.xlu0 %868  ;;  %v961_v44 = vsel %vm954_vm11, %v853_v42, %v941_v37  ;;  %v957_v45 = vsel %vm954_vm11, %v852_v39, %v940_v36 }
 0x234   : > { %v882_v46 = vsel %vm424_vm3, %v881_v3, %v879_v21  ;;  %v886_v48 = vsel %vm424_vm3, %v879_v21, %v881_v3  ;;  %1002 = vmatprep.subr.bf16.mxu1 %v961_v44 }
 0x235   : > { %v888_v49 = vmul.bf16 %v886_v48, %v2578_v31  ;;  %v889_v50 = vmul.bf16 %v882_v46, %v2574_v24  ;;  %1003 = vmatpush1.bf16.msra.mxu1 %v957_v45 }
 0x237   : > { %v944_v51 = vrot.slane %v888_v49, 4  ;;  %v945_v54 = vrot.slane %v889_v50, 4  ;;  %v867_v1 = vpop.permute.xlu1 %866  ;;  %v893_v2 = vpop.permute.xlu0 %892 }
 0x238   : > { %v870_v5 = vsel %vm379_vm2, %v869_v43, %v867_v1  ;;  %v874_v6 = vsel %vm379_vm2, %v867_v1, %v869_v43  ;;  %v894_v8 = vsel %vm464_vm4, %v891_v0, %v893_v2  ;;  %v898_v9 = vsel %vm464_vm4, %v893_v2, %v891_v0 }
 0x239   : > { %v876_v12 = vmul.bf16 %v874_v6, %v2566_v4  ;;  %v877_v16 = vmul.bf16 %v870_v5, %v2562_v61  ;;  %v900_v3 = vmul.bf16 %v894_v8, %v2603_v7  ;;  %v901_v11 = vmul.bf16 %v898_v9, %v2598_v59 }
 0x23b   : > { %v949_v17 = vrot.slane %v901_v11, 4  ;;  %v915_v36 = vpop.permute.xlu1 %914  ;;  %v917_v37 = vpop.permute.xlu0 %916  ;;  %v969_v39 = vsel %vm954_vm11, %v877_v16, %v945_v54  ;;  %v965_v42 = vsel %vm954_vm11, %v876_v12, %v944_v51  ;;  %v948_v21 = vrot.slane %v900_v3, 4 }
 0x23c   : > { %v918_v43 = vsel %vm556_vm7, %v915_v36, %v917_v37  ;;  %v922_v0 = vsel %vm556_vm7, %v917_v37, %v915_v36  ;;  %1004 = vmatprep.subr.bf16.mxu1 %v969_v39  ;;  %v836_v36 = vld [vmem:[%s3309_s2] sm:$0xf] }
 0x23d   : > { %v924_v44 = vmul.bf16 %v918_v43, %v2640_v57  ;;  %v925_v45 = vmul.bf16 %v922_v0, %v2635_v52  ;;  %1005 = vmatpush1.bf16.msra.mxu1 %v965_v42  ;;  %v977_v46 = vsel %vm954_vm11, %v2701_v55, %v949_v17  ;;  %v973_v54 = vsel %vm954_vm11, %v2695_v53, %v948_v21 }
 0x23e   : > { %1006 = vmatprep.subr.bf16.mxu1 %v977_v46 }
 0x23f   : > { %v903_v48 = vpop.permute.xlu1 %902  ;;  %v905_v49 = vpop.permute.xlu0 %904  ;;  %v952_v1 = vrot.slane %v924_v44, 4  ;;  %v953_v2 = vrot.slane %v925_v45, 4 }
 0x240   : > { %v906_v50 = vsel %vm511_vm5, %v903_v48, %v905_v49  ;;  %v910_v51 = vsel %vm511_vm5, %v905_v49, %v903_v48 }
 0x241   : > { %v912_v5 = vmul.bf16 %v906_v50, %v2623_v34  ;;  %v913_v6 = vmul.bf16 %v910_v51, %v2613_v26  ;;  %1007 = vmatpush1.bf16.msra.mxu1 %v973_v54 }
 0x243   : > { %v927_v8 = vpop.permute.xlu1 %926  ;;  %v929_v9 = vpop.permute.xlu0 %928  ;;  %v985_v55 = vsel %vm954_vm11, %v913_v6, %v953_v2  ;;  %v981_v12 = vsel %vm954_vm11, %v912_v5, %v952_v1 }
 0x244   : > { %v930_v16 = vsel %vm596_vm6, %v927_v8, %v929_v9  ;;  %v934_v3 = vsel %vm596_vm6, %v929_v9, %v927_v8  ;;  %1008 = vmatprep.subr.bf16.mxu1 %v985_v55 }
 0x245   : > { %v936_v53 = vmul.bf16 %v930_v16, %v2620_v30  ;;  %v937_v11 = vmul.bf16 %v934_v3, %v2617_v10  ;;  %1009 = vmatpush1.bf16.msra.mxu1 %v981_v12 }
 0x247   : > { %2179 = vmatprep.subr.msk.bf16.mxu1 %vm954_vm11, %v937_v11  ;;  %v997_v17 = vsel %vm954_vm11, %v936_v53, 0 }
 0x249   : > { %1011 = vmatpush1.bf16.msra.mxu1 %v997_v17 }
 0x24c   : > { %2180 = vmatmul.mubr.msk.bf16.vlgmr.msra.gmra.mrb[8].mxu1 %vm992_vm12, %v836_v36 }
 0x254   : > { %v636_v37 = vpop.permute.xlu1 %635  ;;  %v641_v39 = vpop.permute.xlu0 %640 }
 0x255   : > { %v725_v42 = vadd.f32 %v2679_v25, %v636_v37  ;;  %v727_v21 = vadd.f32 %v2681_v19, %v636_v37  ;;  %v729_v43 = vadd.f32 %v2683_v27, %v641_v39  ;;  %v731_v0 = vadd.f32 %v2685_v32, %v641_v39 }
 0x257   : > { %v778_v44 = vadd.f32 %v2671_v18, %v725_v42  ;;  %v780_v45 = vadd.f32 %v2673_v20, %v727_v21  ;;  %v782_v46 = vadd.f32 %v2675_v22, %v729_v43  ;;  %v784_v48 = vadd.f32 %v2677_v23, %v731_v0 }
 0x258   : > { %v646_v49 = vpop.permute.xlu1 %645 }
 0x259   : > { %v735_v50 = vadd.f32 %v2691_v38, %v646_v49  ;;  %v737_v51 = vadd.f32 %v2693_v41, %v646_v49  ;;  %v806_v25 = vpop.permute.xlu0 %805  ;;  %vm798_vm13 = vcmp.ge.f32.partialorder %v782_v46, 0.0  ;;  %vm799_vm14 = vcmp.ge.f32.partialorder %v784_v48, 0.0 }
 0x25a   : > { %v820_v54 = vmul.f32 %v806_v25, %v778_v44  ;;  %v821_v32 = vmul.f32 %v806_v25, %v780_v45  ;;  %vm796_vm15 = vcmp.ge.f32.partialorder %v778_v44, 0.0  ;;  %vm797_vm9 = vcmp.ge.f32.partialorder %v780_v45, 0.0 }
 0x25b   : > { %v788_v19 = vadd.f32 %v2687_v33, %v735_v50  ;;  %v790_v27 = vadd.f32 %v2689_v35, %v737_v51  ;;  %v2328_v51 = vld [vmem:[%s3308_s1 + $0x34] ss:$12 sps:$4 sm:$0xff]   ;;  %v2373_v25 = vmov 1  }
 0x25c   : > { %v828_v20 = vsel %vm796_vm15, %v778_v44, %v820_v54  ;;  %v829_v22 = vsel %vm797_vm9, %v780_v45, %v821_v32  ;;  %1346 = vmatprep.mubr.bf16.mxu1 %v2328_v51  ;;  %2297 = vset.pattern.permute.xlu0 %v2373_v25 }
 0x25d   : > { %v810_v1 = vpop.permute.xlu1 %809  ;;  %v814_v6 = vpop.permute.xlu0 %813  ;;  %vm801_vm15 = vcmp.ge.f32.partialorder %v790_v27, 0.0 }
 0x25e   : > { %v822_v18 = vmul.f32 %v810_v1, %v782_v46  ;;  %v823_v2 = vmul.f32 %v810_v1, %v784_v48  ;;  %v824_v11 = vmul.f32 %v814_v6, %v788_v19  ;;  %v825_v37 = vmul.f32 %v814_v6, %v790_v27 }
 0x260   : > { %v830_v23 = vsel %vm798_vm13, %v782_v46, %v822_v18  ;;  %v831_v38 = vsel %vm799_vm14, %v784_v48, %v823_v2  ;;  %vm800_vm13 = vcmp.ge.f32.partialorder %v788_v19, 0.0  ;;  %v833_v46 = vsel %vm801_vm15, %v790_v27, %v825_v37 }
 0x261   : > { %v2823_v5 = vpack.c.bf16 %v830_v23, %v828_v20  ;;  %v2825_v41 = vpack.c.bf16 %v831_v38, %v829_v22  ;;  %v832_v44 = vsel %vm800_vm13, %v788_v19, %v824_v11  ;;  %v2374_v19 = vmov 4  }
 0x262   : > { %v990_v33 = vpop.permute.xlu1 %989  ;;  %2298 = vset.pattern.permute.xlu1 %v2374_v19 }
 0x263   : > { %1068 = vrot.lane.b32.xlu0 %v2825_v41, %s2362_s27  ;;  %1074 = vrot.lane.b32.xlu1 %v2823_v5, %s2362_s27 }
 0x267   : > { %v1047_v35 = vpop.permute.xlu1 %1046 }
 0x2d5   : > { %v1075_v8 = vpop.permute.xlu1 %1074  ;;  %v1069_v9 = vpop.permute.xlu0 %1068 }
 0x2d6   : > { %v1078_v55 = vsel %vm294_vm0, %v1075_v8, %v1069_v9  ;;  %v1084_v12 = vsel %vm294_vm0, %v1069_v9, %v1075_v8 }
 0x2d7   : > { %v1090_v16 = vmul.bf16 %v1084_v12, %v2535_v29  ;;  %v1091_v3 = vmul.bf16 %v1078_v55, %v2532_v28 }
 0x2d9   : > { %1314 = vmatprep.subr.bf16.mxu1 %v1091_v3 }
 0x2da   : > { %1315 = vmatpush1.bf16.msra.mxu1 %v1090_v16 }
 0x31f   : > { %v1036_v53 = vpop.f32.mrb[8].mxu1 }
 0x320   : > { %v1037_v17 = vadd.f32 %v1036_v53, %v990_v33  ;;  %v1038_v36 = vpop.f32.mrb[9].mxu1 }
 0x321   : > { %v1039_v39 = vadd.f32 %v1038_v36, %v990_v33  ;;  %v1040_v42 = vpop.f32.mrb[10].mxu1 }
 0x322   : > { %vm1043_vm10 = vcmp.ge.f32.partialorder %v1037_v17, 0.0  ;;  %v1049_v21 = vmul.f32 %v1047_v35, %v1037_v17  ;;  %v1041_v43 = vpop.f32.mrb[11].mxu1 }
 0x323   : > { %vm1044_vm14 = vcmp.ge.f32.partialorder %v1039_v39, 0.0  ;;  %v1050_v0 = vmul.f32 %v1047_v35, %v1039_v39 }
 0x324   : > { %v1051_v45 = vsel %vm1043_vm10, %v1037_v17, %v1049_v21 }
 0x325   : > { %v2835_v48 = vpack.c.bf16 %v1051_v45, %v832_v44  ;;  %v1052_v49 = vsel %vm1044_vm14, %v1039_v39, %v1050_v0 }
 0x326   : > { %v2837_v50 = vpack.c.bf16 %v1052_v49, %v833_v46 }
 0x327   : > { %1076 = vrot.lane.b32.xlu1 %v2835_v48, %s2362_s27 }
 0x328   : > { %1070 = vrot.lane.b32.xlu0 %v2837_v50, %s2362_s27 }
 0x32b   : > { %1098 = vrot.lane.b32.xlu1 %v2823_v5, %s2363_s28 }
 0x32c   : > { %1094 = vrot.lane.b32.xlu0 %v2825_v41, %s2363_s28 }
 0x32f   : > { %1100 = vrot.lane.b32.xlu1 %v2835_v48, %s2363_s28 }
 0x330   : > { %1096 = vrot.lane.b32.xlu0 %v2837_v50, %s2363_s28 }
 0x333   : > { %1122 = vrot.lane.b32.xlu1 %v2823_v5, %s2364_s29 }
 0x334   : > { %1118 = vrot.lane.b32.xlu0 %v2825_v41, %s2364_s29 }
 0x337   : > { %1124 = vrot.lane.b32.xlu1 %v2835_v48, %s2364_s29 }
 0x338   : > { %1120 = vrot.lane.b32.xlu0 %v2837_v50, %s2364_s29 }
 0x33b   : > { %1146 = vrot.lane.b32.xlu1 %v2823_v5, %s2365_s30 }
 0x33c   : > { %1142 = vrot.lane.b32.xlu0 %v2825_v41, %s2365_s30 }
 0x33f   : > { %1148 = vrot.lane.b32.xlu1 %v2835_v48, %s2365_s30 }
 0x340   : > { %1144 = vrot.lane.b32.xlu0 %v2837_v50, %s2365_s30 }
 0x343   : > { %1168 = vrot.lane.b32.xlu1 %v2825_v41, %s2366_s7 }
 0x344   : > { %1166 = vrot.lane.b32.xlu0 %v2823_v5, %s2366_s7 }
 0x347   : > { %1172 = vrot.lane.b32.xlu1 %v2837_v50, %s2366_s7 }
 0x348   : > { %1170 = vrot.lane.b32.xlu0 %v2835_v48, %s2366_s7 }
 0x34b   : > { %1192 = vrot.lane.b32.xlu1 %v2825_v41, %s2367_s8 }
 0x34c   : > { %1190 = vrot.lane.b32.xlu0 %v2823_v5, %s2367_s8 }
 0x34f   : > { %1196 = vrot.lane.b32.xlu1 %v2837_v50, %s2367_s8 }
 0x350   : > { %1194 = vrot.lane.b32.xlu0 %v2835_v48, %s2367_s8 }
 0x353   : > { %1216 = vrot.lane.b32.xlu1 %v2825_v41, %s2368_s9 }
 0x354   : > { %1214 = vrot.lane.b32.xlu0 %v2823_v5, %s2368_s9 }
 0x357   : > { %1220 = vrot.lane.b32.xlu1 %v2837_v50, %s2368_s9 }
 0x358   : > { %1218 = vrot.lane.b32.xlu0 %v2835_v48, %s2368_s9 }
 0x35b   : > { %1240 = vrot.lane.b32.xlu1 %v2825_v41, %s2369_s10 }
 0x35c   : > { %1238 = vrot.lane.b32.xlu0 %v2823_v5, %s2369_s10 }
 0x35f   : > { %1244 = vrot.lane.b32.xlu1 %v2837_v50, %s2369_s10 }
 0x360   : > { %1242 = vrot.lane.b32.xlu0 %v2835_v48, %s2369_s10 }
 0x363   : > { %1441 = vperm.xlu1 %2298, %v2517_v14  }
 0x364   : > { %1275 = vperm.xlu0 %2297, %v2517_v14  }
 0x367   : > { %2299 = vset.pattern.permute.xlu1 %v2373_v25 }
 0x399   : > { %v1077_v27 = vpop.permute.xlu1 %1076 }
 0x39a   : > { %v1071_v54 = vpop.permute.xlu0 %1070 }
 0x39b   : > { %v1079_v32 = vsel %vm294_vm0, %v1077_v27, %v1071_v54  ;;  %v1088_v1 = vsel %vm294_vm0, %v1071_v54, %v1077_v27 }
 0x39c   : > { %v1092_v18 = vmul.bf16 %v1088_v1, %v2535_v29  ;;  %v1093_v2 = vmul.bf16 %v1079_v32, %v2532_v28 }
 0x39d   : > { %v1099_v20 = vpop.permute.xlu1 %1098 }
 0x39e   : > { %1316 = vmatprep.subr.bf16.mxu1 %v1093_v2  ;;  %v1095_v22 = vpop.permute.xlu0 %1094 }
 0x39f   : > { %v1102_v23 = vsel %vm339_vm1, %v1099_v20, %v1095_v22  ;;  %v1108_v38 = vsel %vm339_vm1, %v1095_v22, %v1099_v20  ;;  %1317 = vmatpush1.bf16.msra.mxu1 %v1092_v18 }
 0x3a0   : > { %v1114_v14 = vmul.bf16 %v1108_v38, %v2552_v47  ;;  %v1115_v33 = vmul.bf16 %v1102_v23, %v2546_v40 }
 0x3a1   : > { %v1101_v35 = vpop.permute.xlu1 %1100 }
 0x3a2   : > { %1318 = vmatprep.subr.bf16.mxu1 %v1115_v33  ;;  %v1097_v6 = vpop.permute.xlu0 %1096 }
 0x3a3   : > { %v1103_v8 = vsel %vm339_vm1, %v1101_v35, %v1097_v6  ;;  %v1112_v9 = vsel %vm339_vm1, %v1097_v6, %v1101_v35  ;;  %1319 = vmatpush1.bf16.msra.mxu1 %v1114_v14 }
 0x3a4   : > { %v1116_v55 = vmul.bf16 %v1112_v9, %v2552_v47  ;;  %v1117_v12 = vmul.bf16 %v1103_v8, %v2546_v40 }
 0x3a5   : > { %v1123_v16 = vpop.permute.xlu1 %1122 }
 0x3a6   : > { %1320 = vmatprep.subr.bf16.mxu1 %v1117_v12  ;;  %v1119_v3 = vpop.permute.xlu0 %1118 }
 0x3a7   : > { %v1126_v53 = vsel %vm379_vm2, %v1123_v16, %v1119_v3  ;;  %v1132_v11 = vsel %vm379_vm2, %v1119_v3, %v1123_v16  ;;  %1321 = vmatpush1.bf16.msra.mxu1 %v1116_v55 }
 0x3a8   : > { %v1138_v17 = vmul.bf16 %v1132_v11, %v2566_v4  ;;  %v1139_v36 = vmul.bf16 %v1126_v53, %v2562_v61 }
 0x3a9   : > { %v1125_v37 = vpop.permute.xlu1 %1124 }
 0x3aa   : > { %1322 = vmatprep.subr.bf16.mxu1 %v1139_v36  ;;  %v1121_v39 = vpop.permute.xlu0 %1120 }
 0x3ab   : > { %v1127_v42 = vsel %vm379_vm2, %v1125_v37, %v1121_v39  ;;  %v1136_v21 = vsel %vm379_vm2, %v1121_v39, %v1125_v37  ;;  %1323 = vmatpush1.bf16.msra.mxu1 %v1138_v17 }
 0x3ac   : > { %v1140_v43 = vmul.bf16 %v1136_v21, %v2566_v4  ;;  %v1141_v0 = vmul.bf16 %v1127_v42, %v2562_v61 }
 0x3ad   : > { %v1147_v44 = vpop.permute.xlu1 %1146 }
 0x3ae   : > { %1324 = vmatprep.subr.bf16.mxu1 %v1141_v0  ;;  %v1143_v45 = vpop.permute.xlu0 %1142 }
 0x3af   : > { %v1150_v46 = vsel %vm424_vm3, %v1147_v44, %v1143_v45  ;;  %v1156_v49 = vsel %vm424_vm3, %v1143_v45, %v1147_v44  ;;  %1325 = vmatpush1.bf16.msra.mxu1 %v1140_v43 }
 0x3b0   : > { %v1162_v51 = vmul.bf16 %v1156_v49, %v2578_v31  ;;  %v1163_v27 = vmul.bf16 %v1150_v46, %v2574_v24 }
 0x3b1   : > { %v1149_v54 = vpop.permute.xlu1 %1148 }
 0x3b2   : > { %1326 = vmatprep.subr.bf16.mxu1 %v1163_v27  ;;  %v1145_v32 = vpop.permute.xlu0 %1144 }
 0x3b3   : > { %v1151_v1 = vsel %vm424_vm3, %v1149_v54, %v1145_v32  ;;  %v1160_v18 = vsel %vm424_vm3, %v1145_v32, %v1149_v54  ;;  %1327 = vmatpush1.bf16.msra.mxu1 %v1162_v51 }
 0x3b4   : > { %v1164_v2 = vmul.bf16 %v1160_v18, %v2578_v31  ;;  %v1165_v20 = vmul.bf16 %v1151_v1, %v2574_v24 }
 0x3b5   : > { %v1169_v22 = vpop.permute.xlu1 %1168 }
 0x3b6   : > { %1328 = vmatprep.subr.bf16.mxu1 %v1165_v20  ;;  %v1167_v23 = vpop.permute.xlu0 %1166 }
 0x3b7   : > { %1329 = vmatpush1.bf16.msra.mxu1 %v1164_v2  ;;  %v1180_v33 = vsel %vm464_vm4, %v1169_v22, %v1167_v23  ;;  %v1174_v6 = vsel %vm464_vm4, %v1167_v23, %v1169_v22 }
 0x3b8   : > { %1330 = vmatprep.subr.bf16.mxu1 %v2825_v41  ;;  %v1187_v8 = vmul.bf16 %v1180_v33, %v2598_v59  ;;  %v1186_v41 = vmul.bf16 %v1174_v6, %v2603_v7  ;;  %v2326_v33 = vld [vmem:[%s3308_s1 + $0x30] ss:$12 sps:$4 sm:$0xff]   ;;  %v2329_v6 = vld [vmem:[%s3308_s1 + $0x4c] ss:$12 sps:$4 sm:$0xff]  }
 0x3b9   : > { %v1173_v38 = vpop.permute.xlu1 %1172 }
 0x3ba   : > { %v1171_v14 = vpop.permute.xlu0 %1170 }
 0x3bb   : > { %1331 = vmatpush1.bf16.msra.mxu1 %v2823_v5  ;;  %v1184_v55 = vsel %vm464_vm4, %v1173_v38, %v1171_v14  ;;  %v1175_v16 = vsel %vm464_vm4, %v1171_v14, %v1173_v38 }
 0x3bc   : > { %1332 = vmatprep.subr.bf16.mxu1 %v2837_v50  ;;  %v1189_v5 = vmul.bf16 %v1184_v55, %v2598_v59  ;;  %v1188_v53 = vmul.bf16 %v1175_v16, %v2603_v7  ;;  %v2332_v16 = vld [vmem:[%s3308_s1 + $0x38] ss:$12 sps:$4 sm:$0xff]  }
 0x3bd   : > { %v1193_v35 = vpop.permute.xlu1 %1192 }
 0x3be   : > { %v1191_v9 = vpop.permute.xlu0 %1190 }
 0x3bf   : > { %1333 = vmatpush1.bf16.msra.mxu1 %v2835_v48  ;;  %v1204_v50 = vsel %vm511_vm5, %v1193_v35, %v1191_v9  ;;  %v1198_v17 = vsel %vm511_vm5, %v1191_v9, %v1193_v35 }
 0x3c0   : > { %1334 = vmatprep.subr.bf16.mxu1 %v1187_v8  ;;  %v1211_v48 = vmul.bf16 %v1204_v50, %v2613_v26  ;;  %v1210_v39 = vmul.bf16 %v1198_v17, %v2623_v34 }
 0x3c1   : > { %v1197_v12 = vpop.permute.xlu1 %1196 }
 0x3c2   : > { %v1195_v3 = vpop.permute.xlu0 %1194 }
 0x3c3   : > { %1335 = vmatpush1.bf16.msra.mxu1 %v1186_v41  ;;  %v1208_v37 = vsel %vm511_vm5, %v1197_v12, %v1195_v3  ;;  %v1199_v21 = vsel %vm511_vm5, %v1195_v3, %v1197_v12  ;;  %v2331_v12 = vld [vmem:[%s3308_s1 + $0x48] ss:$12 sps:$4 sm:$0xff]  }
 0x3c4   : > { %1336 = vmatprep.subr.bf16.mxu1 %v1189_v5  ;;  %v1213_v43 = vmul.bf16 %v1208_v37, %v2613_v26  ;;  %v1212_v45 = vmul.bf16 %v1199_v21, %v2623_v34  ;;  %v2333_v5 = vld [vmem:[%s3308_s1 + $0x50] ss:$12 sps:$4 sm:$0xff]  }
 0x3c5   : > { %v1217_v11 = vpop.permute.xlu1 %1216 }
 0x3c6   : > { %v1215_v36 = vpop.permute.xlu0 %1214 }
 0x3c7   : > { %1337 = vmatpush1.bf16.msra.mxu1 %v1188_v53  ;;  %v1228_v44 = vsel %vm556_vm7, %v1217_v11, %v1215_v36  ;;  %v1222_v46 = vsel %vm556_vm7, %v1215_v36, %v1217_v11 }
 0x3c8   : > { %1338 = vmatprep.subr.bf16.mxu1 %v1211_v48  ;;  %v1235_v49 = vmul.bf16 %v1228_v44, %v2635_v52  ;;  %v1234_v32 = vmul.bf16 %v1222_v46, %v2640_v57 }
 0x3c9   : > { %v1221_v42 = vpop.permute.xlu1 %1220 }
 0x3ca   : > { %v1219_v0 = vpop.permute.xlu0 %1218 }
 0x3cb   : > { %1339 = vmatpush1.bf16.msra.mxu1 %v1210_v39  ;;  %v1232_v54 = vsel %vm556_vm7, %v1221_v42, %v1219_v0  ;;  %v1223_v1 = vsel %vm556_vm7, %v1219_v0, %v1221_v42 }
 0x3cc   : > { %1340 = vmatprep.subr.bf16.mxu1 %v1213_v43  ;;  %v1237_v18 = vmul.bf16 %v1232_v54, %v2635_v52  ;;  %v1236_v23 = vmul.bf16 %v1223_v1, %v2640_v57 }
 0x3cd   : > { %v1241_v51 = vpop.permute.xlu1 %1240 }
 0x3ce   : > { %v1239_v27 = vpop.permute.xlu0 %1238 }
 0x3cf   : > { %1341 = vmatpush1.bf16.msra.mxu1 %v1212_v45  ;;  %v1252_v2 = vsel %vm596_vm6, %v1241_v51, %v1239_v27  ;;  %v1246_v38 = vsel %vm596_vm6, %v1239_v27, %v1241_v51 }
 0x3d0   : > { %1342 = vmatprep.subr.bf16.mxu1 %v1235_v49  ;;  %v1259_v14 = vmul.bf16 %v1252_v2, %v2617_v10  ;;  %v1258_v8 = vmul.bf16 %v1246_v38, %v2620_v30 }
 0x3d1   : > { %v1245_v20 = vpop.permute.xlu1 %1244 }
 0x3d2   : > { %v1243_v22 = vpop.permute.xlu0 %1242 }
 0x3d3   : > { %1343 = vmatpush1.bf16.msra.mxu1 %v1234_v32  ;;  %v1256_v35 = vsel %vm596_vm6, %v1245_v20, %v1243_v22  ;;  %v1247_v9 = vsel %vm596_vm6, %v1243_v22, %v1245_v20 }
 0x3d4   : > { %1344 = vmatprep.subr.bf16.mxu1 %v1237_v18  ;;  %v1261_v55 = vmul.bf16 %v1256_v35, %v2617_v10  ;;  %v1260_v41 = vmul.bf16 %v1247_v9, %v2620_v30 }
 0x3d7   : > { %1345 = vmatpush1.bf16.msra.mxu1 %v1236_v23 }
 0x3d8   : > { %1367 = vmatprep.subr.bf16.mxu1 %v1259_v14 }
 0x3da   : > { %1347 = vmatmul.mubr.bf16.vlgmr.msra.gmra.mrb[12].mxu1 %v2326_v33 }
 0x3db   : > { %1368 = vmatpush1.bf16.msra.mxu1 %v1258_v8  ;;  %1356 = vmatprep.mubr.bf16.mxu1 %v2329_v6 }
 0x3dc   : > { %1369 = vmatprep.subr.bf16.mxu1 %v1261_v55 }
 0x3df   : > { %1370 = vmatpush1.bf16.msra.mxu1 %v1260_v41 }
 0x3e2   : > { %1357 = vmatmul.mubr.bf16.gmra.mrb[16].mxu1 %v2331_v12  ;;  %v1442_v39 = vpop.permute.xlu1 %1441 }
 0x3e3   : > { %1399 = vmatprep.mubr.bf16.mxu1 %v2370_v13  ;;  %v1276_v48 = vpop.permute.xlu0 %1275 }
 0x3ea   : > { %2195 = vmatmul.mubr.msk.bf16.vlgmr.msra.gmra.mrb[12].mxu1 %vm683_vm8, %v2332_v16 }
 0x3eb   : > { %1409 = vmatprep.mubr.bf16.mxu1 %v2370_v13 }
 0x3f2   : > { %2196 = vmatmul.mubr.msk.bf16.gmra.mrb[16].mxu1 %vm683_vm8, %v2333_v5 }
 0x3f3   : > { %1655 = vmatprep.mubr.bf16.mxu1 %v2370_v13 }
 0x4bd   : > { %v2991_v3 = vpop.f32.mrb[12].mxu1 }
 0x4be   : > { %v2993_v50 = vpop.f32.mrb[13].mxu1 }
 0x4bf   : > { %v2995_v53 = vpop.f32.mrb[14].mxu1 }
 0x4c0   : > { %v2997_v11 = vpop.f32.mrb[15].mxu1 }
 0x4c5   : > { %v2999_v17 = vpop.f32.mrb[16].mxu1 }
 0x4c6   : > { %v3001_v36 = vpop.f32.mrb[17].mxu1 }
 0x4c7   : > { %v1415_v37 = vpop.f32.mrb[18].mxu1 }
 0x4c8   : > { %v2242_v42 = vadd.f32 %v1415_v37, %v1276_v48  ;;  %v1417_v21 = vpop.f32.mrb[19].mxu1 }
 0x4c9   : > { %v2243_v43 = vadd.f32 %v1417_v21, %v1276_v48 }
 0x4ca   : > { %vm1426_vm9 = vcmp.ge.f32.partialorder %v2242_v42, 0.0  ;;  %v1450_v0 = vmul.f32 %v2242_v42, %v1442_v39 }
 0x4cb   : > { %vm1427_vm10 = vcmp.ge.f32.partialorder %v2243_v43, 0.0  ;;  %v1451_v44 = vmul.f32 %v2243_v43, %v1442_v39 }
 0x4cc   : > { %v1458_v45 = vsel %vm1426_vm9, %v2242_v42, %v1450_v0 }
 0x4cd   : > { %v3003_v46 = vpack.c.bf16 %v1458_v45, %v1458_v45  ;;  %v1459_v49 = vsel %vm1427_vm10, %v2243_v43, %v1451_v44 }
 0x4ce   : > { %v3009_v51 = vpack.c.bf16 %v1459_v49, %v1459_v49 }
 0x4cf   : > { %1514 = vrot.lane.b32.xlu1 %v3003_v46, %s2366_s7  ;;  %1480 = vrot.lane.b32.xlu0 %v3003_v46, %s2363_s28 }
 0x4d3   : > { %1478 = vrot.lane.b32.xlu1 %v3009_v51, %s2363_s28  ;;  %1468 = vrot.lane.b32.xlu0 %v3003_v46, %s2362_s27 }
 0x4d7   : > { %1465 = vrot.lane.b32.xlu1 %v3009_v51, %s2362_s27  ;;  %1504 = vrot.lane.b32.xlu0 %v3003_v46, %s2365_s30 }
 0x4db   : > { %1502 = vrot.lane.b32.xlu1 %v3009_v51, %s2365_s30  ;;  %1492 = vrot.lane.b32.xlu0 %v3003_v46, %s2364_s29 }
 0x4df   : > { %1490 = vrot.lane.b32.xlu1 %v3009_v51, %s2364_s29  ;;  %1516 = vrot.lane.b32.xlu0 %v3009_v51, %s2366_s7 }
 0x4e3   : > { %1538 = vrot.lane.b32.xlu1 %v3003_v46, %s2368_s9  ;;  %1540 = vrot.lane.b32.xlu0 %v3009_v51, %s2368_s9 }
 0x4e7   : > { %1526 = vrot.lane.b32.xlu1 %v3003_v46, %s2367_s8  ;;  %1528 = vrot.lane.b32.xlu0 %v3009_v51, %s2367_s8 }
 0x4eb   : > { %1550 = vrot.lane.b32.xlu1 %v3003_v46, %s2369_s10  ;;  %1552 = vrot.lane.b32.xlu0 %v3009_v51, %s2369_s10 }
 0x4ef   : > { %1263 = vperm.xlu1 %2299, %v2734_v56   ;;  %1267 = vperm.xlu0 %2297, %v2739_v58  }
 0x4f3   : > { %2300 = vset.pattern.permute.xlu1 %v2374_v19  ;;  %2301 = vset.pattern.permute.xlu0 %v2374_v19 }
 0x4f4   : > { %1429 = vperm.xlu1 %2300, %v2734_v56   ;;  %1433 = vperm.xlu0 %2301, %v2739_v58  }
 0x4f8   : > { %2302 = vset.pattern.permute.xlu1 %v2373_v25  ;;  %1437 = vperm.xlu0 %2301, %v2746_v60  }
 0x4f9   : > { %1271 = vperm.xlu1 %2302, %v2746_v60  }
 0x4fc   : > { %2304 = vset.pattern.permute.xlu0 %v2372_v63 }
 0x4fd   : > { %1611 = vperm.xlu1 %2302, %v2757_v62  }
 0x501   : > { %2303 = vset.pattern.permute.xlu1 %v2371_v15 }
 0x502   : > { %1667 = vperm.xlu1 %2303, %v2757_v62  }
 0x506   : > { %2305 = vset.pattern.permute.xlu1 %v2372_v63 }
 0x541   : > { %v1515_v19 = vpop.permute.xlu1 %1514  ;;  %v1481_v56 = vpop.permute.xlu0 %1480 }
 0x545   : > { %v1479_v27 = vpop.permute.xlu1 %1478  ;;  %v1469_v58 = vpop.permute.xlu0 %1468 }
 0x546   : > { %v1482_v25 = vsel %vm339_vm1, %v1481_v56, %v1479_v27  ;;  %v1486_v54 = vsel %vm339_vm1, %v1479_v27, %v1481_v56 }
 0x547   : > { %v1488_v60 = vmul.bf16 %v1486_v54, %v2552_v47  ;;  %v1489_v32 = vmul.bf16 %v1482_v25, %v2546_v40 }
 0x549   : > { %v1466_v1 = vpop.permute.xlu1 %1465  ;;  %v1505_v18 = vpop.permute.xlu0 %1504  ;;  %v1564_v2 = vrot.slane %v1488_v60, 4  ;;  %v1565_v63 = vrot.slane %v1489_v32, 4 }
 0x54a   : > { %v1470_v15 = vsel %vm294_vm0, %v1469_v58, %v1466_v1  ;;  %v1474_v62 = vsel %vm294_vm0, %v1466_v1, %v1469_v58 }
 0x54b   : > { %v1476_v20 = vmul.bf16 %v1474_v62, %v2535_v29  ;;  %v1477_v22 = vmul.bf16 %v1470_v15, %v2532_v28 }
 0x54d   : > { %v1503_v23 = vpop.permute.xlu1 %1502  ;;  %v1493_v38 = vpop.permute.xlu0 %1492  ;;  %v1584_v14 = vsel %vm954_vm11, %v1477_v22, %v1565_v63  ;;  %v1580_v33 = vsel %vm954_vm11, %v1476_v20, %v1564_v2 }
 0x54e   : > { %v1506_v35 = vsel %vm424_vm3, %v1505_v18, %v1503_v23  ;;  %v1510_v6 = vsel %vm424_vm3, %v1503_v23, %v1505_v18  ;;  %1623 = vmatprep.subr.bf16.mxu1 %v1584_v14 }
 0x54f   : > { %v1512_v8 = vmul.bf16 %v1510_v6, %v2578_v31  ;;  %v1513_v9 = vmul.bf16 %v1506_v35, %v2574_v24  ;;  %1624 = vmatpush1.bf16.msra.mxu1 %v1580_v33 }
 0x551   : > { %v1568_v55 = vrot.slane %v1512_v8, 4  ;;  %v1569_v41 = vrot.slane %v1513_v9, 4  ;;  %v1491_v12 = vpop.permute.xlu1 %1490  ;;  %v1517_v16 = vpop.permute.xlu0 %1516 }
 0x552   : > { %v1494_v5 = vsel %vm379_vm2, %v1493_v38, %v1491_v12  ;;  %v1498_v48 = vsel %vm379_vm2, %v1491_v12, %v1493_v38  ;;  %v1518_v37 = vsel %vm464_vm4, %v1515_v19, %v1517_v16  ;;  %v1522_v39 = vsel %vm464_vm4, %v1517_v16, %v1515_v19 }
 0x553   : > { %v1500_v42 = vmul.bf16 %v1498_v48, %v2566_v4  ;;  %v1501_v21 = vmul.bf16 %v1494_v5, %v2562_v61  ;;  %v1524_v43 = vmul.bf16 %v1518_v37, %v2603_v7  ;;  %v1525_v0 = vmul.bf16 %v1522_v39, %v2598_v59 }
 0x555   : > { %v1573_v44 = vrot.slane %v1525_v0, 4  ;;  %v1539_v45 = vpop.permute.xlu1 %1538  ;;  %v1541_v49 = vpop.permute.xlu0 %1540  ;;  %v1592_v56 = vsel %vm954_vm11, %v1501_v21, %v1569_v41  ;;  %v1588_v27 = vsel %vm954_vm11, %v1500_v42, %v1568_v55  ;;  %v1572_v58 = vrot.slane %v1524_v43, 4  ;;  %v2197_v55 = vld [vmem:[%s3309_s2 + $0x4] sm:$0xf] }
 0x556   : > { %v1542_v25 = vsel %vm556_vm7, %v1539_v45, %v1541_v49  ;;  %v1546_v19 = vsel %vm556_vm7, %v1541_v49, %v1539_v45  ;;  %1625 = vmatprep.subr.bf16.mxu1 %v1592_v56 }
 0x557   : > { %v1548_v54 = vmul.bf16 %v1542_v25, %v2640_v57  ;;  %v1549_v60 = vmul.bf16 %v1546_v19, %v2635_v52  ;;  %1626 = vmatpush1.bf16.msra.mxu1 %v1588_v27  ;;  %v1600_v32 = vsel %vm954_vm11, %v3009_v51, %v1573_v44  ;;  %v1596_v2 = vsel %vm954_vm11, %v3003_v46, %v1572_v58 }
 0x558   : > { %1627 = vmatprep.subr.bf16.mxu1 %v1600_v32 }
 0x559   : > { %v1527_v1 = vpop.permute.xlu1 %1526  ;;  %v1529_v18 = vpop.permute.xlu0 %1528  ;;  %v1576_v63 = vrot.slane %v1548_v54, 4  ;;  %v1577_v20 = vrot.slane %v1549_v60, 4 }
 0x55a   : > { %v1530_v15 = vsel %vm511_vm5, %v1527_v1, %v1529_v18  ;;  %v1534_v62 = vsel %vm511_vm5, %v1529_v18, %v1527_v1 }
 0x55b   : > { %v1536_v22 = vmul.bf16 %v1530_v15, %v2623_v34  ;;  %v1537_v23 = vmul.bf16 %v1534_v62, %v2613_v26  ;;  %1628 = vmatpush1.bf16.msra.mxu1 %v1596_v2 }
 0x55d   : > { %v1551_v38 = vpop.permute.xlu1 %1550  ;;  %v1553_v14 = vpop.permute.xlu0 %1552  ;;  %v1608_v51 = vsel %vm954_vm11, %v1537_v23, %v1577_v20  ;;  %v1604_v33 = vsel %vm954_vm11, %v1536_v22, %v1576_v63 }
 0x55e   : > { %v1554_v35 = vsel %vm596_vm6, %v1551_v38, %v1553_v14  ;;  %v1558_v6 = vsel %vm596_vm6, %v1553_v14, %v1551_v38  ;;  %1629 = vmatprep.subr.bf16.mxu1 %v1608_v51 }
 0x55f   : > { %v1560_v46 = vmul.bf16 %v1554_v35, %v2620_v30  ;;  %v1561_v8 = vmul.bf16 %v1558_v6, %v2617_v10  ;;  %1630 = vmatpush1.bf16.msra.mxu1 %v1604_v33 }
 0x561   : > { %2198 = vmatprep.subr.msk.bf16.mxu1 %vm954_vm11, %v1561_v8  ;;  %v1618_v9 = vsel %vm954_vm11, %v1560_v46, 0 }
 0x563   : > { %1632 = vmatpush1.bf16.msra.mxu1 %v1618_v9 }
 0x566   : > { %2199 = vmatmul.mubr.msk.bf16.vlgmr.msra.gmra.mrb[20].mxu1 %vm992_vm12, %v2197_v55  ;;  %v2336_v55 = vld [vmem:[%s3308_s1 + $0x64] ss:$12 sps:$4 sm:$0xff]  }
 0x567   : > { %2020 = vmatprep.mubr.bf16.mxu1 %v2370_v13  ;;  %1967 = vmatprep.mubr.bf16.mxu0 %v2336_v55 }
 0x56e   : > { %v1264_v41 = vpop.permute.xlu1 %1263  ;;  %v1268_v12 = vpop.permute.xlu0 %1267 }
 0x56f   : > { %v2236_v16 = vadd.f32 %v2991_v3, %v1264_v41  ;;  %v2237_v5 = vadd.f32 %v2993_v50, %v1264_v41  ;;  %v2238_v48 = vadd.f32 %v2995_v53, %v1268_v12  ;;  %v2239_v37 = vadd.f32 %v2997_v11, %v1268_v12  ;;  %v2342_v41 = vld [vmem:[%s3310_s3 + $0x8] sm:$0xff]  ;;  %v2343_v12 = vld [vmem:[%s3310_s3] sm:$0xff] }
 0x571   : > { %vm1420_vm11 = vcmp.ge.f32.partialorder %v2236_v16, 0.0  ;;  %vm1421_vm12 = vcmp.ge.f32.partialorder %v2237_v5, 0.0  ;;  %vm1422_vm13 = vcmp.ge.f32.partialorder %v2238_v48, 0.0  ;;  %vm1423_vm14 = vcmp.ge.f32.partialorder %v2239_v37, 0.0 }
 0x573   : > { %v1430_v39 = vpop.permute.xlu1 %1429  ;;  %v1434_v42 = vpop.permute.xlu0 %1433 }
 0x574   : > { %v1444_v21 = vmul.f32 %v2236_v16, %v1430_v39  ;;  %v1445_v43 = vmul.f32 %v2237_v5, %v1430_v39  ;;  %v1446_v0 = vmul.f32 %v2238_v48, %v1434_v42  ;;  %v1447_v44 = vmul.f32 %v2239_v37, %v1434_v42 }
 0x576   : > { %v1452_v45 = vsel %vm1420_vm11, %v2236_v16, %v1444_v21  ;;  %v1453_v49 = vsel %vm1421_vm12, %v2237_v5, %v1445_v43  ;;  %v1454_v56 = vsel %vm1422_vm13, %v2238_v48, %v1446_v0  ;;  %v1455_v3 = vsel %vm1423_vm14, %v2239_v37, %v1447_v44  ;;  %v2344_v16 = vld [vmem:[%s3310_s3 + $0x10] sm:$0xff]  ;;  %v2345_v5 = vld [vmem:[%s3310_s3 + $0x18] sm:$0xff] }
 0x577   : > { %v3106_v27 = vpack.c.bf16 %v1454_v56, %v1452_v45  ;;  %v3108_v50 = vpack.c.bf16 %v1455_v3, %v1453_v49  ;;  %v1438_v54 = vpop.permute.xlu0 %1437  ;;  %v2375_v48 = vmov 5  }
 0x578   : > { %v1272_v53 = vpop.permute.xlu1 %1271 }
 0x579   : > { %v2240_v11 = vadd.f32 %v2999_v17, %v1272_v53  ;;  %v2241_v58 = vadd.f32 %v3001_v36, %v1272_v53  ;;  %1689 = vrot.lane.b32.xlu0 %v3108_v50, %s2362_s27  ;;  %1695 = vrot.lane.b32.xlu1 %v3106_v27, %s2362_s27 }
 0x57b   : > { %v1448_v62 = vmul.f32 %v2240_v11, %v1438_v54  ;;  %vm1424_vm15 = vcmp.ge.f32.partialorder %v2240_v11, 0.0  ;;  %v1449_v20 = vmul.f32 %v2241_v58, %v1438_v54  ;;  %vm1425_vm9 = vcmp.ge.f32.partialorder %v2241_v58, 0.0 }
 0x57c   : > { %v1612_v25 = vpop.permute.xlu1 %1611 }
 0x57d   : > { %v1456_v33 = vsel %vm1424_vm15, %v2240_v11, %v1448_v62  ;;  %v1457_v6 = vsel %vm1425_vm9, %v2241_v58, %v1449_v20 }
 0x581   : > { %v1668_v19 = vpop.permute.xlu1 %1667 }
 0x5eb   : > { %v1696_v60 = vpop.permute.xlu1 %1695  ;;  %v1690_v32 = vpop.permute.xlu0 %1689 }
 0x5ec   : > { %v1699_v1 = vsel %vm294_vm0, %v1696_v60, %v1690_v32  ;;  %v1705_v18 = vsel %vm294_vm0, %v1690_v32, %v1696_v60 }
 0x5ed   : > { %v1711_v15 = vmul.bf16 %v1705_v18, %v2535_v29  ;;  %v1712_v17 = vmul.bf16 %v1699_v1, %v2532_v28 }
 0x5ef   : > { %1935 = vmatprep.subr.bf16.mxu0 %v1712_v17 }
 0x5f0   : > { %1936 = vmatpush1.bf16.msra.mxu0 %v1711_v15 }
 0x639   : > { %v1657_v36 = vpop.f32.mrb[20].mxu1 }
 0x63a   : > { %v1658_v2 = vadd.f32 %v1657_v36, %v1612_v25  ;;  %v1659_v63 = vpop.f32.mrb[21].mxu1 }
 0x63b   : > { %v1660_v22 = vadd.f32 %v1659_v63, %v1612_v25  ;;  %v1661_v23 = vpop.f32.mrb[22].mxu1 }
 0x63c   : > { %vm1664_vm10 = vcmp.ge.f32.partialorder %v1658_v2, 0.0  ;;  %v1670_v38 = vmul.f32 %v1668_v19, %v1658_v2  ;;  %v1662_v14 = vpop.f32.mrb[23].mxu1 }
 0x63d   : > { %vm1665_vm11 = vcmp.ge.f32.partialorder %v1660_v22, 0.0  ;;  %v1671_v51 = vmul.f32 %v1668_v19, %v1660_v22 }
 0x63e   : > { %v1672_v35 = vsel %vm1664_vm10, %v1658_v2, %v1670_v38 }
 0x63f   : > { %v3120_v46 = vpack.c.bf16 %v1672_v35, %v1456_v33  ;;  %v1673_v8 = vsel %vm1665_vm11, %v1660_v22, %v1671_v51 }
 0x640   : > { %v3122_v9 = vpack.c.bf16 %v1673_v8, %v1457_v6 }
 0x641   : > { %1697 = vrot.lane.b32.xlu1 %v3120_v46, %s2362_s27 }
 0x642   : > { %1691 = vrot.lane.b32.xlu0 %v3122_v9, %s2362_s27 }
 0x645   : > { %1719 = vrot.lane.b32.xlu1 %v3106_v27, %s2363_s28 }
 0x646   : > { %1715 = vrot.lane.b32.xlu0 %v3108_v50, %s2363_s28 }
 0x649   : > { %1721 = vrot.lane.b32.xlu1 %v3120_v46, %s2363_s28 }
 0x64a   : > { %1717 = vrot.lane.b32.xlu0 %v3122_v9, %s2363_s28 }
 0x64d   : > { %1743 = vrot.lane.b32.xlu1 %v3106_v27, %s2364_s29 }
 0x64e   : > { %1739 = vrot.lane.b32.xlu0 %v3108_v50, %s2364_s29 }
 0x651   : > { %1745 = vrot.lane.b32.xlu1 %v3120_v46, %s2364_s29 }
 0x652   : > { %1741 = vrot.lane.b32.xlu0 %v3122_v9, %s2364_s29  ;;  %s3288_s29 = scalar_lea.vmem %s3313_s6, %s2218_s23 }
 0x655   : > { %1767 = vrot.lane.b32.xlu1 %v3106_v27, %s2365_s30 }
 0x656   : > { %1763 = vrot.lane.b32.xlu0 %v3108_v50, %s2365_s30 }
 0x659   : > { %1769 = vrot.lane.b32.xlu1 %v3120_v46, %s2365_s30 }
 0x65a   : > { %1765 = vrot.lane.b32.xlu0 %v3122_v9, %s2365_s30 }
 0x65d   : > { %1789 = vrot.lane.b32.xlu1 %v3108_v50, %s2366_s7 }
 0x65e   : > { %1787 = vrot.lane.b32.xlu0 %v3106_v27, %s2366_s7 }
 0x661   : > { %1813 = vrot.lane.b32.xlu1 %v3108_v50, %s2367_s8 }
 0x662   : > { %1791 = vrot.lane.b32.xlu0 %v3120_v46, %s2366_s7 }
 0x665   : > { %1793 = vrot.lane.b32.xlu1 %v3122_v9, %s2366_s7 }
 0x666   : > { %1811 = vrot.lane.b32.xlu0 %v3106_v27, %s2367_s8 }
 0x669   : > { %1837 = vrot.lane.b32.xlu1 %v3108_v50, %s2368_s9 }
 0x66a   : > { %1815 = vrot.lane.b32.xlu0 %v3120_v46, %s2367_s8 }
 0x66d   : > { %1817 = vrot.lane.b32.xlu1 %v3122_v9, %s2367_s8 }
 0x66e   : > { %1835 = vrot.lane.b32.xlu0 %v3106_v27, %s2368_s9 }
 0x671   : > { %1861 = vrot.lane.b32.xlu1 %v3108_v50, %s2369_s10 }
 0x672   : > { %1859 = vrot.lane.b32.xlu0 %v3106_v27, %s2369_s10 }
 0x675   : > { %1841 = vrot.lane.b32.xlu1 %v3122_v9, %s2368_s9 }
 0x676   : > { %1839 = vrot.lane.b32.xlu0 %v3120_v46, %s2368_s9 }
 0x679   : > { %1865 = vrot.lane.b32.xlu1 %v3122_v9, %s2369_s10 }
 0x67a   : > { %1863 = vrot.lane.b32.xlu0 %v3120_v46, %s2369_s10 }
 0x67d   : > { %1888 = vperm.xlu1 %2305, %v2342_v41  }
 0x67e   : > { %1884 = vperm.xlu0 %2304, %v2343_v12  }
 0x681   : > { %1892 = vperm.xlu1 %2305, %v2344_v16  }
 0x682   : > { %1896 = vperm.xlu0 %2304, %v2345_v5  }
 0x685   : > { %2306 = vset.pattern.permute.xlu1 %v2375_v48 }
 0x686   : > { %2058 = vperm.xlu1 %2306, %v2343_v12   ;;  %2307 = vset.pattern.permute.xlu0 %v2375_v48 }
 0x687   : > { %2062 = vperm.xlu0 %2307, %v2342_v41  }
 0x68a   : > { %2066 = vperm.xlu1 %2306, %v2344_v16  }
 0x68e   : > { %2070 = vperm.xlu1 %2306, %v2345_v5  }
 0x6b3   : > { %v1698_v37 = vpop.permute.xlu1 %1697 }
 0x6b4   : > { %v1692_v39 = vpop.permute.xlu0 %1691 }
 0x6b5   : > { %v1700_v42 = vsel %vm294_vm0, %v1698_v37, %v1692_v39  ;;  %v1709_v21 = vsel %vm294_vm0, %v1692_v39, %v1698_v37 }
 0x6b6   : > { %v1713_v43 = vmul.bf16 %v1709_v21, %v2535_v29  ;;  %v1714_v0 = vmul.bf16 %v1700_v42, %v2532_v28 }
 0x6b7   : > { %v1720_v44 = vpop.permute.xlu1 %1719 }
 0x6b8   : > { %1937 = vmatprep.subr.bf16.mxu0 %v1714_v0  ;;  %v1716_v45 = vpop.permute.xlu0 %1715 }
 0x6b9   : > { %v1723_v49 = vsel %vm339_vm1, %v1720_v44, %v1716_v45  ;;  %v1729_v56 = vsel %vm339_vm1, %v1716_v45, %v1720_v44  ;;  %1938 = vmatpush1.bf16.msra.mxu0 %v1713_v43 }
 0x6ba   : > { %v1735_v3 = vmul.bf16 %v1729_v56, %v2552_v47  ;;  %v1736_v53 = vmul.bf16 %v1723_v49, %v2546_v40 }
 0x6bb   : > { %v1722_v11 = vpop.permute.xlu1 %1721 }
 0x6bc   : > { %1939 = vmatprep.subr.bf16.mxu0 %v1736_v53  ;;  %v1718_v58 = vpop.permute.xlu0 %1717 }
 0x6bd   : > { %v1724_v25 = vsel %vm339_vm1, %v1722_v11, %v1718_v58  ;;  %v1733_v29 = vsel %vm339_vm1, %v1718_v58, %v1722_v11  ;;  %1940 = vmatpush1.bf16.msra.mxu0 %v1735_v3 }
 0x6be   : > { %v1737_v28 = vmul.bf16 %v1733_v29, %v2552_v47  ;;  %v1738_v19 = vmul.bf16 %v1724_v25, %v2546_v40 }
 0x6bf   : > { %v1744_v54 = vpop.permute.xlu1 %1743 }
 0x6c0   : > { %1941 = vmatprep.subr.bf16.mxu0 %v1738_v19  ;;  %v1740_v60 = vpop.permute.xlu0 %1739 }
 0x6c1   : > { %v1747_v32 = vsel %vm379_vm2, %v1744_v54, %v1740_v60  ;;  %v1753_v1 = vsel %vm379_vm2, %v1740_v60, %v1744_v54  ;;  %1942 = vmatpush1.bf16.msra.mxu0 %v1737_v28 }
 0x6c2   : > { %v1759_v18 = vmul.bf16 %v1753_v1, %v2566_v4  ;;  %v1760_v15 = vmul.bf16 %v1747_v32, %v2562_v61 }
 0x6c3   : > { %v1746_v17 = vpop.permute.xlu1 %1745 }
 0x6c4   : > { %1943 = vmatprep.subr.bf16.mxu0 %v1760_v15  ;;  %v1742_v36 = vpop.permute.xlu0 %1741 }
 0x6c5   : > { %v1748_v62 = vsel %vm379_vm2, %v1746_v17, %v1742_v36  ;;  %v1757_v47 = vsel %vm379_vm2, %v1742_v36, %v1746_v17  ;;  %1944 = vmatpush1.bf16.msra.mxu0 %v1759_v18 }
 0x6c6   : > { %v1761_v40 = vmul.bf16 %v1757_v47, %v2566_v4  ;;  %v1762_v2 = vmul.bf16 %v1748_v62, %v2562_v61 }
 0x6c7   : > { %v1768_v63 = vpop.permute.xlu1 %1767 }
 0x6c8   : > { %1945 = vmatprep.subr.bf16.mxu0 %v1762_v2  ;;  %v1764_v20 = vpop.permute.xlu0 %1763 }
 0x6c9   : > { %v1771_v22 = vsel %vm424_vm3, %v1768_v63, %v1764_v20  ;;  %v1777_v23 = vsel %vm424_vm3, %v1764_v20, %v1768_v63  ;;  %1946 = vmatpush1.bf16.msra.mxu0 %v1761_v40  ;;  %v2334_v20 = vld [vmem:[%s3308_s1 + $0x60] ss:$12 sps:$4 sm:$0xff]  }
 0x6ca   : > { %v1783_v38 = vmul.bf16 %v1777_v23, %v2578_v31  ;;  %v1784_v14 = vmul.bf16 %v1771_v22, %v2574_v24 }
 0x6cb   : > { %v1770_v51 = vpop.permute.xlu1 %1769 }
 0x6cc   : > { %1947 = vmatprep.subr.bf16.mxu0 %v1784_v14  ;;  %v1766_v33 = vpop.permute.xlu0 %1765 }
 0x6cd   : > { %v1772_v35 = vsel %vm424_vm3, %v1770_v51, %v1766_v33  ;;  %v1781_v4 = vsel %vm424_vm3, %v1766_v33, %v1770_v51  ;;  %1948 = vmatpush1.bf16.msra.mxu0 %v1783_v38 }
 0x6ce   : > { %v1785_v61 = vmul.bf16 %v1781_v4, %v2578_v31  ;;  %v1786_v6 = vmul.bf16 %v1772_v35, %v2574_v24 }
 0x6cf   : > { %v1790_v8 = vpop.permute.xlu1 %1789 }
 0x6d0   : > { %1949 = vmatprep.subr.bf16.mxu0 %v1786_v6  ;;  %v1788_v55 = vpop.permute.xlu0 %1787 }
 0x6d1   : > { %1950 = vmatpush1.bf16.msra.mxu0 %v1785_v61  ;;  %v1801_v16 = vsel %vm464_vm4, %v1790_v8, %v1788_v55  ;;  %v1795_v48 = vsel %vm464_vm4, %v1788_v55, %v1790_v8 }
 0x6d2   : > { %1951 = vmatprep.subr.bf16.mxu0 %v3108_v50  ;;  %v1808_v31 = vmul.bf16 %v1801_v16, %v2598_v59  ;;  %v1807_v50 = vmul.bf16 %v1795_v48, %v2603_v7 }
 0x6d3   : > { %v1814_v41 = vpop.permute.xlu1 %1813 }
 0x6d4   : > { %v1792_v12 = vpop.permute.xlu0 %1791 }
 0x6d5   : > { %1952 = vmatpush1.bf16.msra.mxu0 %v3106_v27 }
 0x6d6   : > { %1953 = vmatprep.subr.bf16.mxu0 %v3122_v9 }
 0x6d7   : > { %v1794_v5 = vpop.permute.xlu1 %1793 }
 0x6d8   : > { %v1812_v24 = vpop.permute.xlu0 %1811  ;;  %v1805_v37 = vsel %vm464_vm4, %v1794_v5, %v1792_v12  ;;  %v1796_v42 = vsel %vm464_vm4, %v1792_v12, %v1794_v5 }
 0x6d9   : > { %1954 = vmatpush1.bf16.msra.mxu0 %v3120_v46  ;;  %v1810_v27 = vmul.bf16 %v1805_v37, %v2598_v59  ;;  %v1825_v9 = vsel %vm511_vm5, %v1814_v41, %v1812_v24  ;;  %v1809_v43 = vmul.bf16 %v1796_v42, %v2603_v7  ;;  %v1819_v44 = vsel %vm511_vm5, %v1812_v24, %v1814_v41  ;;  %v2346_v24 = vld [vmem:[%s2427_s26] sm:$0xff] }
 0x6da   : > { %1955 = vmatprep.subr.bf16.mxu0 %v1808_v31  ;;  %v1832_v46 = vmul.bf16 %v1825_v9, %v2613_v26  ;;  %v1831_v56 = vmul.bf16 %v1819_v44, %v2623_v34 }
 0x6db   : > { %v1838_v39 = vpop.permute.xlu1 %1837 }
 0x6dc   : > { %v1816_v21 = vpop.permute.xlu0 %1815 }
 0x6dd   : > { %1956 = vmatpush1.bf16.msra.mxu0 %v1807_v50 }
 0x6de   : > { %1957 = vmatprep.subr.bf16.mxu0 %v1810_v27 }
 0x6df   : > { %v1818_v0 = vpop.permute.xlu1 %1817 }
 0x6e0   : > { %v1836_v45 = vpop.permute.xlu0 %1835  ;;  %v1829_v49 = vsel %vm511_vm5, %v1818_v0, %v1816_v21  ;;  %v1820_v3 = vsel %vm511_vm5, %v1816_v21, %v1818_v0 }
 0x6e1   : > { %1958 = vmatpush1.bf16.msra.mxu0 %v1809_v43  ;;  %v1834_v53 = vmul.bf16 %v1829_v49, %v2613_v26  ;;  %v1849_v7 = vsel %vm556_vm7, %v1838_v39, %v1836_v45  ;;  %v1833_v19 = vmul.bf16 %v1820_v3, %v2623_v34  ;;  %v1843_v60 = vsel %vm556_vm7, %v1836_v45, %v1838_v39  ;;  %v2347_v39 = vld [vmem:[%s2427_s26 + $0x8] sm:$0xff]  ;;  %v2348_v43 = vld [vmem:[%s2427_s26 + $0x10] sm:$0xff]  ;;  %v2349_v45 = vld [vmem:[%s2427_s26 + $0x18] sm:$0xff] }
 0x6e2   : > { %1959 = vmatprep.subr.bf16.mxu0 %v1832_v46  ;;  %v1856_v26 = vmul.bf16 %v1849_v7, %v2635_v52  ;;  %v1855_v18 = vmul.bf16 %v1843_v60, %v2640_v57 }
 0x6e3   : > { %v1862_v59 = vpop.permute.xlu1 %1861 }
 0x6e4   : > { %v1860_v11 = vpop.permute.xlu0 %1859 }
 0x6e5   : > { %v1867_v58 = vsel %vm596_vm6, %v1860_v11, %v1862_v59  ;;  %v1873_v25 = vsel %vm596_vm6, %v1862_v59, %v1860_v11  ;;  %1960 = vmatpush1.bf16.msra.mxu0 %v1831_v56 }
 0x6e6   : > { %v1879_v29 = vmul.bf16 %v1867_v58, %v2620_v30  ;;  %v1880_v28 = vmul.bf16 %v1873_v25, %v2617_v10  ;;  %1961 = vmatprep.subr.bf16.mxu0 %v1834_v53 }
 0x6e7   : > { %v1842_v54 = vpop.permute.xlu1 %1841 }
 0x6e8   : > { %1988 = vmatprep.subr.bf16.mxu1 %v1880_v28  ;;  %v1840_v32 = vpop.permute.xlu0 %1839 }
 0x6e9   : > { %v1853_v1 = vsel %vm556_vm7, %v1842_v54, %v1840_v32  ;;  %1962 = vmatpush1.bf16.msra.mxu0 %v1833_v19  ;;  %1989 = vmatpush1.bf16.msra.mxu1 %v1879_v29  ;;  %v1844_v17 = vsel %vm556_vm7, %v1840_v32, %v1842_v54 }
 0x6ea   : > { %1963 = vmatprep.subr.bf16.mxu0 %v1856_v26  ;;  %v1858_v36 = vmul.bf16 %v1853_v1, %v2635_v52  ;;  %v1857_v63 = vmul.bf16 %v1844_v17, %v2640_v57  ;;  %v2337_v52 = vld [vmem:[%s3308_s1 + $0x68] ss:$12 sps:$4 sm:$0xff]   ;;  %v2341_v57 = vld [vmem:[%s3308_s1 + $0x80] ss:$12 sps:$4 sm:$0xff]  }
 0x6eb   : > { %v1866_v15 = vpop.permute.xlu1 %1865 }
 0x6ec   : > { %v1864_v34 = vpop.permute.xlu0 %1863 }
 0x6ed   : > { %v1868_v62 = vsel %vm596_vm6, %v1864_v34, %v1866_v15  ;;  %v1877_v47 = vsel %vm596_vm6, %v1866_v15, %v1864_v34  ;;  %1964 = vmatpush1.bf16.msra.mxu0 %v1855_v18  ;;  %v2350_v34 = vld [vmem:[%s2427_s26 + $0x20] sm:$0xff] }
 0x6ee   : > { %v1881_v40 = vmul.bf16 %v1868_v62, %v2620_v30  ;;  %v1882_v2 = vmul.bf16 %v1877_v47, %v2617_v10  ;;  %1965 = vmatprep.subr.bf16.mxu0 %v1858_v36  ;;  %v2338_v30 = vld [vmem:[%s3308_s1 + $0x7c] ss:$12 sps:$4 sm:$0xff]   ;;  %v2340_v10 = vld [vmem:[%s3308_s1 + $0x78] ss:$12 sps:$4 sm:$0xff]  }
 0x6f0   : > { %1990 = vmatprep.subr.bf16.mxu1 %v1882_v2 }
 0x6f1   : > { %1966 = vmatpush1.bf16.msra.mxu0 %v1857_v63  ;;  %1991 = vmatpush1.bf16.msra.mxu1 %v1881_v40  ;;  %v2351_v40 = vld [vmem:[%s2427_s26 + $0x28] sm:$0xff] }
 0x6f4   : > { %1968 = vmatmul.mubr.bf16.vlgmr.msra.gmra.mrb[8].mxu0 %v2334_v20  ;;  %2214 = vmatmul.mubr.msk.bf16.vlgmr.msra.gmra.mrb[24].mxu1 %vm683_vm8, %v2337_v52  ;;  %v2352_v52 = vld [vmem:[%s2427_s26 + $0x30] sm:$0xff] }
 0x6f5   : > { %1977 = vmatprep.mubr.bf16.mxu0 %v2338_v30  ;;  %2030 = vmatprep.mubr.bf16.mxu1 %v2370_v13 }
 0x6fc   : > { %1978 = vmatmul.mubr.bf16.gmra.mrb[12].mxu0 %v2340_v10  ;;  %2215 = vmatmul.mubr.msk.bf16.gmra.mrb[28].mxu1 %vm683_vm8, %v2341_v57  ;;  %v1889_v22 = vpop.permute.xlu1 %1888 }
 0x6fd   : > { %v1885_v38 = vpop.permute.xlu0 %1884 }
 0x700   : > { %v1893_v23 = vpop.permute.xlu1 %1892 }
 0x701   : > { %v1897_v51 = vpop.permute.xlu0 %1896 }
 0x705   : > { %v2059_v14 = vpop.permute.xlu1 %2058 }
 0x706   : > { %v2063_v21 = vpop.permute.xlu0 %2062 }
 0x709   : > { %v2067_v44 = vpop.permute.xlu1 %2066 }
 0x70d   : > { %v2071_v57 = vpop.permute.xlu1 %2070 }
 0x7c7   : > { %v1969_v33 = vpop.f32.mrb[8].mxu0  ;;  %v2022_v35 = vpop.f32.mrb[24].mxu1 }
 0x7c8   : > { %v1970_v13 = vadd.f32 %v1969_v33, %v1885_v38  ;;  %v1971_v4 = vpop.f32.mrb[9].mxu0  ;;  %v2024_v61 = vpop.f32.mrb[25].mxu1 }
 0x7c9   : > { %v1972_v6 = vadd.f32 %v1971_v4, %v1885_v38  ;;  %v1973_v8 = vpop.f32.mrb[10].mxu0  ;;  %v2026_v55 = vpop.f32.mrb[26].mxu1 }
 0x7ca   : > { %v2023_v41 = vadd.f32 %v2022_v35, %v1970_v13  ;;  %v1974_v12 = vadd.f32 %v1973_v8, %v1889_v22  ;;  %v1975_v16 = vpop.f32.mrb[11].mxu0  ;;  %v2028_v5 = vpop.f32.mrb[27].mxu1 }
 0x7cb   : > { %v2025_v48 = vadd.f32 %v2024_v61, %v1972_v6  ;;  %v1976_v31 = vadd.f32 %v1975_v16, %v1889_v22  ;;  %v2353_v22 = vld [vmem:[%s2427_s26 + $0x38] sm:$0xff] }
 0x7cc   : > { %v2041_v37 = vadd.f32 %v2346_v24, %v2023_v41  ;;  %v2027_v50 = vadd.f32 %v2026_v55, %v1974_v12 }
 0x7cd   : > { %v2042_v42 = vadd.f32 %v2347_v39, %v2025_v48  ;;  %v2029_v27 = vadd.f32 %v2028_v5, %v1976_v31 }
 0x7ce   : > { %vm2049_vm0 = vcmp.ge.f32.partialorder %v2041_v37, 0.0  ;;  %v2073_v9 = vmul.f32 %v2059_v14, %v2041_v37  ;;  %v2043_v0 = vadd.f32 %v2348_v43, %v2027_v50 }
 0x7cf   : > { %vm2050_vm1 = vcmp.ge.f32.partialorder %v2042_v42, 0.0  ;;  %v2074_v46 = vmul.f32 %v2059_v14, %v2042_v42  ;;  %v2044_v49 = vadd.f32 %v2349_v45, %v2029_v27  ;;  %v1979_v56 = vpop.f32.mrb[12].mxu0  ;;  %v2032_v59 = vpop.f32.mrb[28].mxu1 }
 0x7d0   : > { %v2081_v3 = vsel %vm2049_vm0, %v2041_v37, %v2073_v9  ;;  %vm2051_vm2 = vcmp.ge.f32.partialorder %v2043_v0, 0.0  ;;  %v1980_v53 = vadd.f32 %v1979_v56, %v1893_v23  ;;  %v2075_v11 = vmul.f32 %v2063_v21, %v2043_v0  ;;  %v1981_v7 = vpop.f32.mrb[13].mxu0  ;;  %v2034_v58 = vpop.f32.mrb[29].mxu1 }
 0x7d1   : > { %v2082_v25 = vsel %vm2050_vm1, %v2042_v42, %v2074_v46  ;;  %2089 = vst [vmem:[%s3288_s29] sm:$0xff] %v2081_v3  ;;  %vm2052_vm3 = vcmp.ge.f32.partialorder %v2044_v49, 0.0  ;;  %v2076_v29 = vmul.f32 %v2063_v21, %v2044_v49  ;;  %v1982_v28 = vadd.f32 %v1981_v7, %v1893_v23  ;;  %v1983_v19 = vpop.f32.mrb[14].mxu0  ;;  %v2036_v54 = vpop.f32.mrb[30].mxu1 }
 0x7d2   : > { %2090 = vst [vmem:[%s3288_s29 + $0x8] sm:$0xff] %v2082_v25  ;;  %v2033_v60 = vadd.f32 %v2032_v59, %v1980_v53  ;;  %v2083_v26 = vsel %vm2051_vm2, %v2043_v0, %v2075_v11  ;;  %v1984_v32 = vadd.f32 %v1983_v19, %v1897_v51  ;;  %v1985_v1 = vpop.f32.mrb[15].mxu0  ;;  %v2038_v18 = vpop.f32.mrb[31].mxu1 }
 0x7d3   : > { %v2084_v15 = vsel %vm2052_vm3, %v2044_v49, %v2076_v29  ;;  %2091 = vst [vmem:[%s3288_s29 + $0x10] sm:$0xff] %v2083_v26  ;;  %v2035_v17 = vadd.f32 %v2034_v58, %v1982_v28  ;;  %v1986_v36 = vadd.f32 %v1985_v1, %v1897_v51 }
 0x7d4   : > { %v2045_v62 = vadd.f32 %v2350_v34, %v2033_v60  ;;  %2092 = vst [vmem:[%s3288_s29 + $0x18] sm:$0xff] %v2084_v15  ;;  %v2037_v47 = vadd.f32 %v2036_v54, %v1984_v32 }
 0x7d5   : > { %v2046_v2 = vadd.f32 %v2351_v40, %v2035_v17  ;;  %v2039_v63 = vadd.f32 %v2038_v18, %v1986_v36 }
 0x7d6   : > { %vm2053_vm4 = vcmp.ge.f32.partialorder %v2045_v62, 0.0  ;;  %v2077_v20 = vmul.f32 %v2067_v44, %v2045_v62  ;;  %v2047_v30 = vadd.f32 %v2352_v52, %v2037_v47 }
 0x7d7   : > { %vm2054_vm5 = vcmp.ge.f32.partialorder %v2046_v2, 0.0  ;;  %v2078_v10 = vmul.f32 %v2067_v44, %v2046_v2  ;;  %v2048_v23 = vadd.f32 %v2353_v22, %v2039_v63 }
 0x7d8   : > { %v2085_v38 = vsel %vm2053_vm4, %v2045_v62, %v2077_v20  ;;  %vm2055_vm6 = vcmp.ge.f32.partialorder %v2047_v30, 0.0  ;;  %v2079_v14 = vmul.f32 %v2071_v57, %v2047_v30 }
 0x7d9   : > { %2093 = vst [vmem:[%s3288_s29 + $0x20] sm:$0xff] %v2085_v38  ;;  %v2086_v51 = vsel %vm2054_vm5, %v2046_v2, %v2078_v10  ;;  %vm2056_vm7 = vcmp.ge.f32.partialorder %v2048_v23, 0.0  ;;  %v2080_v33 = vmul.f32 %v2071_v57, %v2048_v23 }
 0x7da   : > { %2094 = vst [vmem:[%s3288_s29 + $0x28] sm:$0xff] %v2086_v51  ;;  %v2087_v35 = vsel %vm2055_vm6, %v2047_v30, %v2079_v14 }
 0x7db   : > { %2095 = vst [vmem:[%s3288_s29 + $0x30] sm:$0xff] %v2087_v35  ;;  %v2088_v13 = vsel %vm2056_vm7, %v2048_v23, %v2080_v33 }
 0x7dc   : > { %2096 = vst [vmem:[%s3288_s29 + $0x38] sm:$0xff] %v2088_v13 }
 0x7dd PF: > { %s16_s21 = sadd.s32 1, %s2360_s21  }
 0x7de   : > { %p13_p4 = scmp.ge.s32.totalorder %s16_s21, 4  }
 0x7e0   :  { %15 = sbr.rel (!%p13_p4) target bundleno = 1 (0x1), region = 77 }

</bundles_post_ra>
